<compile_context>
chip_gen: v7x
topology: tpu7x:2x2x1
jax: 0.10.0
libtpu: 0.0.40
codegen_flags: <defaults>
</compile_context>

<pallas_src>
import jax
import jax.numpy as jnp
from jax import lax
from jax.experimental import pallas as pl

# ---------------- model hyper-parameters (small synthetic CLIP-like ViT) -------
B = 2            # batch
C = 3            # image channels
IMG = 16         # image height = width
P = 8            # patch size  -> grid 2x2
GH = GW = IMG // P
NPATCH = GH * GW
S = NPATCH + 1   # tokens (patches + CLS)
BS = B * S       # rows of the residual stream
D = 64           # transformer width
H = 4            # attention heads
DH = D // H      # head dim
HBS = H * BS     # head-replicated rows
LAYERS = 2       # transformer blocks
MLP = 4 * D      # mlp hidden
OUT_DIM = 32     # visual.output_dim (image_encoding_dim)
FC1 = 512        # fc1 hidden (as in the module)
NUM_CLASSES = 10
NC_PAD = 128     # lane-dense padded logits width
R = 4            # LoRA rank
ALPHA = 1.0      # LoRA alpha
EPS = 1e-5

BF16 = jnp.bfloat16
F32 = jnp.float32


# ================================ fused kernel =================================
def _ln(x, g, b):
    """LayerNorm over the last dim, f32 math; g/b are (1, K)."""
    mu = jnp.mean(x, axis=-1, keepdims=True)
    xc = x - mu
    var = jnp.mean(xc * xc, axis=-1, keepdims=True)
    return xc * lax.rsqrt(var + EPS) * g + b


def _clip_kernel(
    # constant inputs --------------------------------------------------------
    x0_ref,                                   # (BS, D)     embedded tokens (pre ln_pre)
    addmask_ref,                              # (HBS, HBS)  0 / -1e30 (same head & image)
    headmask_ref,                             # (HBS, D)    0/1 per-head lane mask
    lnpre_g_ref, lnpre_b_ref,                 # (1, D)
    # stacked per-layer weights (leading dim = LAYERS) -------------------------
    ln1_g_ref, ln1_b_ref,                     # (L, 1, D)
    wq_ref, wk_ref, wv_ref,                   # (L, D, D)   bf16 (in_proj split)
    bq_ref, bk_ref, bv_ref,                   # (L, 1, D)   f32
    wout_ref, bout_ref,                       # (L, D, D) bf16 (LoRA folded), (L, 1, D)
    ln2_g_ref, ln2_b_ref,                     # (L, 1, D)
    wfc_ref, bfc_ref,                         # (L, D, MLP) bf16 (LoRA folded), (L, 1, MLP)
    wpr_ref, bpr_ref,                         # (L, MLP, D) bf16 (LoRA folded), (L, 1, D)
    # head -------------------------------------------------------------------
    lnpost_g_ref, lnpost_b_ref,               # (1, D)
    wproj_ref,                                # (D, OUT_DIM)     bf16
    wfc1_ref, bfc1_ref,                       # (OUT_DIM, FC1) bf16, (1, FC1)
    wfc2_ref, bfc2_ref,                       # (FC1, NC_PAD)  bf16, (1, NC_PAD)
    # outputs ----------------------------------------------------------------
    logits_ref,                               # (B, NC_PAD)
    feat_ref,                                 # (B, FC1)
):
    addmask = addmask_ref[...]                         # (HBS, HBS) f32
    headmask = headmask_ref[...]                       # (HBS, D)   f32 0/1
    hm_q = headmask * (float(DH) ** -0.5)              # fold 1/sqrt(DH) into q mask (once)

    # ---- ln_pre on the embedded tokens --------------------------------------
    x = _ln(x0_ref[...].astype(F32), lnpre_g_ref[...], lnpre_b_ref[...])   # (BS, D) f32

    # ---- residual blocks (static unroll; all weights already VMEM resident) -
    for l in range(LAYERS):
        # -------- attention: ln1 -> in_proj -> masked SDPA -> out_proj -------
        h = _ln(x, ln1_g_ref[l], ln1_b_ref[l])                       # (BS, D) f32
        h_rep = jnp.concatenate([h] * H, axis=0).astype(BF16)        # (HBS, D) bf16

        q = jnp.dot(h_rep, wq_ref[l], preferred_element_type=F32) + bq_ref[l]
        k = jnp.dot(h_rep, wk_ref[l], preferred_element_type=F32) + bk_ref[l]
        v = jnp.dot(h_rep, wv_ref[l], preferred_element_type=F32) + bv_ref[l]

        # lane-mask q per head block: row block h keeps only lanes of head h,
        # so one (HBS,HBS) matmul yields every per-head score; cross-head and
        # cross-image entries are killed by the additive mask.
        qm = (q * hm_q).astype(BF16)
        kb = k.astype(BF16)
        vb = v.astype(BF16)

        s = lax.dot_general(qm, kb, (((1,), (1,)), ((), ())),
                            preferred_element_type=F32) + addmask    # (HBS, HBS)
        s = s - jnp.max(s, axis=-1, keepdims=True)
        p = jnp.exp(s)
        p = p * pl.reciprocal(jnp.sum(p, axis=-1, keepdims=True), approx=True)

        o = jnp.dot(p.astype(BF16), vb, preferred_element_type=F32)  # (HBS, D) f32
        o = o * headmask                                             # keep own head lanes
        oc = o[0:BS]                                                 # sum head row blocks
        for hd in range(1, H):                                       # -> multi-head concat
            oc = oc + o[hd * BS:(hd + 1) * BS]                       # (BS, D)

        attn = jnp.dot(oc.astype(BF16), wout_ref[l],
                       preferred_element_type=F32) + bout_ref[l]
        x = x + attn

        # -------- MLP: ln2 -> c_fc -> QuickGELU -> c_proj --------------------
        h2 = _ln(x, ln2_g_ref[l], ln2_b_ref[l]).astype(BF16)
        m = jnp.dot(h2, wfc_ref[l], preferred_element_type=F32) + bfc_ref[l]
        m = m * jax.nn.sigmoid(1.702 * m)                            # QuickGELU (f32)
        x = x + jnp.dot(m.astype(BF16), wpr_ref[l],
                        preferred_element_type=F32) + bpr_ref[l]

    # ---- head: CLS pick -> ln_post -> proj -> fc1/ReLU -> fc2 ---------------
    # CLS token of image b is residual row b*S; static row slices (no matmul).
    cls = jnp.concatenate([x[b * S:b * S + 1, :] for b in range(B)], axis=0)  # (B, D)
    cls = _ln(cls, lnpost_g_ref[...], lnpost_b_ref[...])
    img = jnp.dot(cls.astype(BF16), wproj_ref[...], preferred_element_type=F32)
    f1 = jnp.dot(img.astype(BF16), wfc1_ref[...],
                 preferred_element_type=F32) + bfc1_ref[...]
    f1 = jnp.maximum(f1, 0.0)                                        # ReLU -> feature
    feat_ref[...] = f1.astype(feat_ref.dtype)
    logits_ref[...] = (jnp.dot(f1.astype(BF16), wfc2_ref[...],
                               preferred_element_type=F32)
                       + bfc2_ref[...]).astype(logits_ref.dtype)


def clip_encoder_and_head(kp, x0):
    """One pallas_call (no grid) for the whole transformer + classifier head."""
    out_shape = (jax.ShapeDtypeStruct((B, NC_PAD), F32),
                 jax.ShapeDtypeStruct((B, FC1), F32))
    logits_pad, feature = pl.pallas_call(
        _clip_kernel,
        out_shape=out_shape,
    )(
        x0, kp["addmask"], kp["headmask"],
        kp["lnpre_g"], kp["lnpre_b"],
        kp["ln1_g"], kp["ln1_b"],
        kp["wq"], kp["wk"], kp["wv"], kp["bq"], kp["bk"], kp["bv"],
        kp["wout"], kp["bout"],
        kp["ln2_g"], kp["ln2_b"],
        kp["wfc"], kp["bfc"], kp["wpr"], kp["bpr"],
        kp["lnpost_g"], kp["lnpost_b"],
        kp["wproj"], kp["wfc1"], kp["bfc1"], kp["wfc2"], kp["bfc2"],
    )
    return logits_pad[:, :NUM_CLASSES], feature       # slice padded logits lanes


# ================================ parameter init ===============================
def init_params(key):
    keys = iter(jax.random.split(key, 256))

    def nrm(shape, scale=0.02):
        return scale * jax.random.normal(next(keys), shape, dtype=F32)

    s = ALPHA / R

    def lora_pair(fan_in, fan_out):
        # matches the module: randn * (alpha / r) on both A and B (init only)
        return (jax.random.normal(next(keys), (fan_in, R), F32) * s,
                jax.random.normal(next(keys), (R, fan_out), F32) * s)

    params = {
        # conv1 patch embedding (bias=False): torch (D,C,P,P) stored as (C*P*P, D)
        "conv1_w": nrm((C * P * P, D)),
        "class_embedding": nrm((D,)),
        "pos_embedding": nrm((S, D)),
        "ln_pre_g": jnp.ones((D,), F32), "ln_pre_b": jnp.zeros((D,), F32),
        "ln_post_g": jnp.ones((D,), F32), "ln_post_b": jnp.zeros((D,), F32),
        "proj": nrm((D, OUT_DIM)),
        # classifier head (plain nn.Linear, no LoRA)
        "fc1_w": nrm((OUT_DIM, FC1)), "fc1_b": jnp.zeros((FC1,), F32),
        "fc2_w": nrm((FC1, NUM_CLASSES)), "fc2_b": jnp.zeros((NUM_CLASSES,), F32),
        "blocks": [],
    }
    for _ in range(LAYERS):
        oa, ob = lora_pair(D, D)
        fa, fb = lora_pair(D, MLP)
        pa, pb = lora_pair(MLP, D)
        params["blocks"].append({
            "ln1_g": jnp.ones((D,), F32), "ln1_b": jnp.zeros((D,), F32),
            # attn in_proj (not an nn.Linear in CLIP -> no LoRA)
            "in_proj_w": nrm((D, 3 * D)), "in_proj_b": jnp.zeros((3 * D,), F32),
            # attn out_proj (nn.Linear -> LoRA)
            "out_w": nrm((D, D)), "out_b": jnp.zeros((D,), F32), "out_A": oa, "out_B": ob,
            "ln2_g": jnp.ones((D,), F32), "ln2_b": jnp.zeros((D,), F32),
            # mlp.c_fc (LoRA) and mlp.c_proj (LoRA)
            "fc_w": nrm((D, MLP)), "fc_b": jnp.zeros((MLP,), F32), "fc_A": fa, "fc_B": fb,
            "pr_w": nrm((MLP, D)), "pr_b": jnp.zeros((D,), F32), "pr_A": pa, "pr_B": pb,
        })
    return params


def prepare_kernel_params(p):
    """Fold LoRA (W_eff = W + A@B), split in_proj into q/k/v, stack per-layer
    weights, precompute the constant attention masks, cast MXU weights to bf16
    and zero-pad fc2 to a lane-dense 128-wide output."""
    def st(name, shape):
        return jnp.stack([blk[name] for blk in p["blocks"]]).reshape((LAYERS,) + shape)

    def st_fold(w, a, b):
        return jnp.stack([blk[w] + blk[a] @ blk[b] for blk in p["blocks"]]).astype(BF16)

    in_w = jnp.stack([blk["in_proj_w"] for blk in p["blocks"]])    # (L, D, 3D)
    in_b = jnp.stack([blk["in_proj_b"] for blk in p["blocks"]])    # (L, 3D)

    # constant masks (head-replicated row layout: row = head*BS + token)
    row_head = jnp.arange(HBS) // BS
    row_img = (jnp.arange(HBS) % BS) // S
    same = (row_head[:, None] == row_head[None, :]) & (row_img[:, None] == row_img[None, :])
    addmask = jnp.where(same, 0.0, -1e30).astype(F32)              # (HBS, HBS)
    headmask = (row_head[:, None] == (jnp.arange(D) // DH)[None, :]).astype(F32)  # (HBS, D)

    wfc2_pad = jnp.zeros((FC1, NC_PAD), F32).at[:, :NUM_CLASSES].set(p["fc2_w"])
    bfc2_pad = jnp.zeros((1, NC_PAD), F32).at[:, :NUM_CLASSES].set(
        p["fc2_b"].reshape(1, NUM_CLASSES))

    return {
        "conv1_w": p["conv1_w"],
        "class_embedding": p["class_embedding"],
        "pos_embedding": p["pos_embedding"],
        "addmask": addmask, "headmask": headmask,
        "lnpre_g": p["ln_pre_g"].reshape(1, D), "lnpre_b": p["ln_pre_b"].reshape(1, D),
        "ln1_g": st("ln1_g", (1, D)), "ln1_b": st("ln1_b", (1, D)),
        "wq": in_w[:, :, :D].astype(BF16),
        "wk": in_w[:, :, D:2 * D].astype(BF16),
        "wv": in_w[:, :, 2 * D:].astype(BF16),
        "bq": in_b[:, :D].reshape(LAYERS, 1, D),
        "bk": in_b[:, D:2 * D].reshape(LAYERS, 1, D),
        "bv": in_b[:, 2 * D:].reshape(LAYERS, 1, D),
        "wout": st_fold("out_w", "out_A", "out_B"), "bout": st("out_b", (1, D)),
        "ln2_g": st("ln2_g", (1, D)), "ln2_b": st("ln2_b", (1, D)),
        "wfc": st_fold("fc_w", "fc_A", "fc_B"), "bfc": st("fc_b", (1, MLP)),
        "wpr": st_fold("pr_w", "pr_A", "pr_B"), "bpr": st("pr_b", (1, D)),
        "lnpost_g": p["ln_post_g"].reshape(1, D), "lnpost_b": p["ln_post_b"].reshape(1, D),
        "wproj": p["proj"].astype(BF16),
        "wfc1": p["fc1_w"].astype(BF16), "bfc1": p["fc1_b"].reshape(1, FC1),
        "wfc2": wfc2_pad.astype(BF16), "bfc2": bfc2_pad,
    }


# ==================================== forward ==================================
@jax.jit
def forward(kp, x_nchw):
    # plain-JAX glue: patchify NCHW, patch-embed matmul (conv1, bias-free),
    # CLS-token concat and positional embedding — a few KB of work feeding the
    # single fused Pallas kernel below.
    xb = x_nchw.shape[0]
    xp = x_nchw.reshape(xb, C, GH, P, GW, P).transpose(0, 2, 4, 1, 3, 5)
    xp = xp.reshape(xb * NPATCH, C * P * P)
    pe = (xp @ kp["conv1_w"]).reshape(xb, NPATCH, D)
    cls = jnp.broadcast_to(kp["class_embedding"].reshape(1, 1, D), (xb, 1, D))
    x0 = (jnp.concatenate([cls, pe], axis=1) + kp["pos_embedding"][None]).reshape(xb * S, D)

    logits, feature = clip_encoder_and_head(kp, x0)   # fully fused in one kernel
    return logits, feature                            # matches module's (x, feature)


# ==================================== main =====================================
if __name__ == "__main__":
    key = jax.random.PRNGKey(0)
    k_params, k_input = jax.random.split(key)
    params = init_params(k_params)
    kparams = prepare_kernel_params(params)
    x = jax.random.normal(k_input, (B, C, IMG, IMG), dtype=F32)   # NCHW like torch

    logits, feature = forward(kparams, x)
    jax.block_until_ready((logits, feature))

    assert logits.shape == (B, NUM_CLASSES) and logits.dtype == F32
    assert feature.shape == (B, FC1) and feature.dtype == F32
    assert bool(jnp.all(jnp.isfinite(logits))) and bool(jnp.all(jnp.isfinite(feature)))
    assert bool(jnp.all(feature >= 0.0))   # ReLU output
    print("KERNEL_OK")
</pallas_src>

<mosaic_0001>
module attributes {stable_mosaic.version = 11 : i64} {
  func.func @_clip_kernel(%arg0: memref<10x64xf32, #tpu.memory_space<vmem>>, %arg1: memref<40x40xf32, #tpu.memory_space<vmem>>, %arg2: memref<40x64xf32, #tpu.memory_space<vmem>>, %arg3: memref<1x64xf32, #tpu.memory_space<vmem>>, %arg4: memref<1x64xf32, #tpu.memory_space<vmem>>, %arg5: memref<2x1x64xf32, #tpu.memory_space<vmem>>, %arg6: memref<2x1x64xf32, #tpu.memory_space<vmem>>, %arg7: memref<2x64x64xbf16, #tpu.memory_space<vmem>>, %arg8: memref<2x64x64xbf16, #tpu.memory_space<vmem>>, %arg9: memref<2x64x64xbf16, #tpu.memory_space<vmem>>, %arg10: memref<2x1x64xf32, #tpu.memory_space<vmem>>, %arg11: memref<2x1x64xf32, #tpu.memory_space<vmem>>, %arg12: memref<2x1x64xf32, #tpu.memory_space<vmem>>, %arg13: memref<2x64x64xbf16, #tpu.memory_space<vmem>>, %arg14: memref<2x1x64xf32, #tpu.memory_space<vmem>>, %arg15: memref<2x1x64xf32, #tpu.memory_space<vmem>>, %arg16: memref<2x1x64xf32, #tpu.memory_space<vmem>>, %arg17: memref<2x64x256xbf16, #tpu.memory_space<vmem>>, %arg18: memref<2x1x256xf32, #tpu.memory_space<vmem>>, %arg19: memref<2x256x64xbf16, #tpu.memory_space<vmem>>, %arg20: memref<2x1x64xf32, #tpu.memory_space<vmem>>, %arg21: memref<1x64xf32, #tpu.memory_space<vmem>>, %arg22: memref<1x64xf32, #tpu.memory_space<vmem>>, %arg23: memref<64x32xbf16, #tpu.memory_space<vmem>>, %arg24: memref<32x512xbf16, #tpu.memory_space<vmem>>, %arg25: memref<1x512xf32, #tpu.memory_space<vmem>>, %arg26: memref<512x128xbf16, #tpu.memory_space<vmem>>, %arg27: memref<1x128xf32, #tpu.memory_space<vmem>>, %arg28: memref<2x128xf32, #tpu.memory_space<vmem>>, %arg29: memref<2x512xf32, #tpu.memory_space<vmem>>) attributes {dimension_semantics = [], scalar_prefetch = 0 : i64, scratch_operands = 0 : i64, tpu.core_type = #tpu.core_type<tc>} {
    %c0 = arith.constant 0 : index
    %c0_0 = arith.constant 0 : index
    %0 = vector.load %arg1[%c0, %c0_0] : memref<40x40xf32, #tpu.memory_space<vmem>>, vector<40x40xf32>
    %c0_1 = arith.constant 0 : index
    %c0_2 = arith.constant 0 : index
    %1 = vector.load %arg2[%c0_1, %c0_2] : memref<40x64xf32, #tpu.memory_space<vmem>>, vector<40x64xf32>
    %cst = arith.constant 2.500000e-01 : f32
    %2 = vector.broadcast %cst : f32 to vector<40x64xf32>
    %3 = arith.mulf %1, %2 : vector<40x64xf32>
    %c0_3 = arith.constant 0 : index
    %c0_4 = arith.constant 0 : index
    %4 = vector.load %arg0[%c0_3, %c0_4] : memref<10x64xf32, #tpu.memory_space<vmem>>, vector<10x64xf32>
    %c0_5 = arith.constant 0 : index
    %c0_6 = arith.constant 0 : index
    %5 = vector.load %arg3[%c0_5, %c0_6] : memref<1x64xf32, #tpu.memory_space<vmem>>, vector<1x64xf32>
    %c0_7 = arith.constant 0 : index
    %c0_8 = arith.constant 0 : index
    %6 = vector.load %arg4[%c0_7, %c0_8] : memref<1x64xf32, #tpu.memory_space<vmem>>, vector<1x64xf32>
    %cst_9 = arith.constant dense<0.000000e+00> : vector<10xf32>
    %7 = vector.multi_reduction <add>, %4, %cst_9 [1] : vector<10x64xf32> to vector<10xf32>
    %8 = vector.shape_cast %7 : vector<10xf32> to vector<10x1xf32>
    %cst_10 = arith.constant 6.400000e+01 : f32
    %9 = vector.broadcast %cst_10 : f32 to vector<10x1xf32>
    %10 = arith.divf %8, %9 : vector<10x1xf32>
    %11 = vector.broadcast %10 : vector<10x1xf32> to vector<10x64xf32>
    %12 = arith.subf %4, %11 : vector<10x64xf32>
    %13 = arith.mulf %12, %12 : vector<10x64xf32>
    %cst_11 = arith.constant dense<0.000000e+00> : vector<10xf32>
    %14 = vector.multi_reduction <add>, %13, %cst_11 [1] : vector<10x64xf32> to vector<10xf32>
    %15 = vector.shape_cast %14 : vector<10xf32> to vector<10x1xf32>
    %cst_12 = arith.constant 6.400000e+01 : f32
    %16 = vector.broadcast %cst_12 : f32 to vector<10x1xf32>
    %17 = arith.divf %15, %16 : vector<10x1xf32>
    %cst_13 = arith.constant 9.99999974E-6 : f32
    %18 = vector.broadcast %cst_13 : f32 to vector<10x1xf32>
    %19 = arith.addf %17, %18 : vector<10x1xf32>
    %20 = math.rsqrt %19 : vector<10x1xf32>
    %21 = vector.broadcast %20 : vector<10x1xf32> to vector<10x64xf32>
    %22 = arith.mulf %12, %21 : vector<10x64xf32>
    %23 = vector.broadcast %5 : vector<1x64xf32> to vector<10x64xf32>
    %24 = arith.mulf %22, %23 : vector<10x64xf32>
    %25 = vector.broadcast %6 : vector<1x64xf32> to vector<10x64xf32>
    %26 = arith.addf %24, %25 : vector<10x64xf32>
    %c0_14 = arith.constant 0 : index
    %c0_15 = arith.constant 0 : index
    %c0_16 = arith.constant 0 : index
    %27 = vector.load %arg5[%c0_14, %c0_15, %c0_16] : memref<2x1x64xf32, #tpu.memory_space<vmem>>, vector<1x1x64xf32>
    %28 = vector.shape_cast %27 : vector<1x1x64xf32> to vector<1x64xf32>
    %c0_17 = arith.constant 0 : index
    %c0_18 = arith.constant 0 : index
    %c0_19 = arith.constant 0 : index
    %29 = vector.load %arg6[%c0_17, %c0_18, %c0_19] : memref<2x1x64xf32, #tpu.memory_space<vmem>>, vector<1x1x64xf32>
    %30 = vector.shape_cast %29 : vector<1x1x64xf32> to vector<1x64xf32>
    %cst_20 = arith.constant dense<0.000000e+00> : vector<10xf32>
    %31 = vector.multi_reduction <add>, %26, %cst_20 [1] : vector<10x64xf32> to vector<10xf32>
    %32 = vector.shape_cast %31 : vector<10xf32> to vector<10x1xf32>
    %cst_21 = arith.constant 6.400000e+01 : f32
    %33 = vector.broadcast %cst_21 : f32 to vector<10x1xf32>
    %34 = arith.divf %32, %33 : vector<10x1xf32>
    %35 = vector.broadcast %34 : vector<10x1xf32> to vector<10x64xf32>
    %36 = arith.subf %26, %35 : vector<10x64xf32>
    %37 = arith.mulf %36, %36 : vector<10x64xf32>
    %cst_22 = arith.constant dense<0.000000e+00> : vector<10xf32>
    %38 = vector.multi_reduction <add>, %37, %cst_22 [1] : vector<10x64xf32> to vector<10xf32>
    %39 = vector.shape_cast %38 : vector<10xf32> to vector<10x1xf32>
    %cst_23 = arith.constant 6.400000e+01 : f32
    %40 = vector.broadcast %cst_23 : f32 to vector<10x1xf32>
    %41 = arith.divf %39, %40 : vector<10x1xf32>
    %cst_24 = arith.constant 9.99999974E-6 : f32
    %42 = vector.broadcast %cst_24 : f32 to vector<10x1xf32>
    %43 = arith.addf %41, %42 : vector<10x1xf32>
    %44 = math.rsqrt %43 : vector<10x1xf32>
    %45 = vector.broadcast %44 : vector<10x1xf32> to vector<10x64xf32>
    %46 = arith.mulf %36, %45 : vector<10x64xf32>
    %47 = vector.broadcast %28 : vector<1x64xf32> to vector<10x64xf32>
    %48 = arith.mulf %46, %47 : vector<10x64xf32>
    %49 = vector.broadcast %30 : vector<1x64xf32> to vector<10x64xf32>
    %50 = arith.addf %48, %49 : vector<10x64xf32>
    %51 = tpu.concatenate %50, %50, %50, %50 in 0 : vector<10x64xf32>, vector<10x64xf32>, vector<10x64xf32>, vector<10x64xf32> -> vector<40x64xf32>
    %52 = arith.truncf %51 : vector<40x64xf32> to vector<40x64xbf16>
    %c0_25 = arith.constant 0 : index
    %c0_26 = arith.constant 0 : index
    %c0_27 = arith.constant 0 : index
    %53 = vector.load %arg7[%c0_25, %c0_26, %c0_27] : memref<2x64x64xbf16, #tpu.memory_space<vmem>>, vector<1x64x64xbf16>
    %54 = vector.shape_cast %53 : vector<1x64x64xbf16> to vector<64x64xbf16>
    %cst_28 = arith.constant dense<0.000000e+00> : vector<40x64xf32>
    %55 = tpu.matmul %52, %54, %cst_28 {dimension_numbers = #tpu.dot_dimension_numbers<[1], [0], [0], [1], [0, 0, 1, 1], [], []>} : vector<40x64xbf16>, vector<64x64xbf16>, vector<40x64xf32> -> vector<40x64xf32>
    %c0_29 = arith.constant 0 : index
    %c0_30 = arith.constant 0 : index
    %c0_31 = arith.constant 0 : index
    %56 = vector.load %arg10[%c0_29, %c0_30, %c0_31] : memref<2x1x64xf32, #tpu.memory_space<vmem>>, vector<1x1x64xf32>
    %57 = vector.shape_cast %56 : vector<1x1x64xf32> to vector<1x64xf32>
    %58 = vector.broadcast %57 : vector<1x64xf32> to vector<40x64xf32>
    %59 = arith.addf %55, %58 : vector<40x64xf32>
    %c0_32 = arith.constant 0 : index
    %c0_33 = arith.constant 0 : index
    %c0_34 = arith.constant 0 : index
    %60 = vector.load %arg8[%c0_32, %c0_33, %c0_34] : memref<2x64x64xbf16, #tpu.memory_space<vmem>>, vector<1x64x64xbf16>
    %61 = vector.shape_cast %60 : vector<1x64x64xbf16> to vector<64x64xbf16>
    %cst_35 = arith.constant dense<0.000000e+00> : vector<40x64xf32>
    %62 = tpu.matmul %52, %61, %cst_35 {dimension_numbers = #tpu.dot_dimension_numbers<[1], [0], [0], [1], [0, 0, 1, 1], [], []>} : vector<40x64xbf16>, vector<64x64xbf16>, vector<40x64xf32> -> vector<40x64xf32>
    %c0_36 = arith.constant 0 : index
    %c0_37 = arith.constant 0 : index
    %c0_38 = arith.constant 0 : index
    %63 = vector.load %arg11[%c0_36, %c0_37, %c0_38] : memref<2x1x64xf32, #tpu.memory_space<vmem>>, vector<1x1x64xf32>
    %64 = vector.shape_cast %63 : vector<1x1x64xf32> to vector<1x64xf32>
    %65 = vector.broadcast %64 : vector<1x64xf32> to vector<40x64xf32>
    %66 = arith.addf %62, %65 : vector<40x64xf32>
    %c0_39 = arith.constant 0 : index
    %c0_40 = arith.constant 0 : index
    %c0_41 = arith.constant 0 : index
    %67 = vector.load %arg9[%c0_39, %c0_40, %c0_41] : memref<2x64x64xbf16, #tpu.memory_space<vmem>>, vector<1x64x64xbf16>
    %68 = vector.shape_cast %67 : vector<1x64x64xbf16> to vector<64x64xbf16>
    %cst_42 = arith.constant dense<0.000000e+00> : vector<40x64xf32>
    %69 = tpu.matmul %52, %68, %cst_42 {dimension_numbers = #tpu.dot_dimension_numbers<[1], [0], [0], [1], [0, 0, 1, 1], [], []>} : vector<40x64xbf16>, vector<64x64xbf16>, vector<40x64xf32> -> vector<40x64xf32>
    %c0_43 = arith.constant 0 : index
    %c0_44 = arith.constant 0 : index
    %c0_45 = arith.constant 0 : index
    %70 = vector.load %arg12[%c0_43, %c0_44, %c0_45] : memref<2x1x64xf32, #tpu.memory_space<vmem>>, vector<1x1x64xf32>
    %71 = vector.shape_cast %70 : vector<1x1x64xf32> to vector<1x64xf32>
    %72 = vector.broadcast %71 : vector<1x64xf32> to vector<40x64xf32>
    %73 = arith.addf %69, %72 : vector<40x64xf32>
    %74 = arith.mulf %59, %3 : vector<40x64xf32>
    %75 = arith.truncf %74 : vector<40x64xf32> to vector<40x64xbf16>
    %76 = arith.truncf %66 : vector<40x64xf32> to vector<40x64xbf16>
    %77 = arith.truncf %73 : vector<40x64xf32> to vector<40x64xbf16>
    %cst_46 = arith.constant dense<0.000000e+00> : vector<40x40xf32>
    %78 = tpu.matmul %75, %76, %cst_46 {dimension_numbers = #tpu.dot_dimension_numbers<[1], [1], [0], [0], [0, 0, 1, 0], [], []>} : vector<40x64xbf16>, vector<40x64xbf16>, vector<40x40xf32> -> vector<40x40xf32>
    %79 = arith.addf %78, %0 : vector<40x40xf32>
    %cst_47 = arith.constant dense<0xFF800000> : vector<40xf32>
    %80 = vector.multi_reduction <maximumf>, %79, %cst_47 [1] : vector<40x40xf32> to vector<40xf32>
    %81 = vector.shape_cast %80 : vector<40xf32> to vector<40x1xf32>
    %82 = vector.broadcast %81 : vector<40x1xf32> to vector<40x40xf32>
    %83 = arith.subf %79, %82 : vector<40x40xf32>
    %84 = math.exp %83 : vector<40x40xf32>
    %cst_48 = arith.constant dense<0.000000e+00> : vector<40xf32>
    %85 = vector.multi_reduction <add>, %84, %cst_48 [1] : vector<40x40xf32> to vector<40xf32>
    %86 = vector.shape_cast %85 : vector<40xf32> to vector<40x1xf32>
    %87 = tpu.reciprocal %86 {approx = true} : vector<40x1xf32> -> vector<40x1xf32>
    %88 = vector.broadcast %87 : vector<40x1xf32> to vector<40x40xf32>
    %89 = arith.mulf %84, %88 : vector<40x40xf32>
    %90 = arith.truncf %89 : vector<40x40xf32> to vector<40x40xbf16>
    %cst_49 = arith.constant dense<0.000000e+00> : vector<40x64xf32>
    %91 = tpu.matmul %90, %77, %cst_49 {dimension_numbers = #tpu.dot_dimension_numbers<[1], [0], [0], [1], [0, 0, 1, 1], [], []>} : vector<40x40xbf16>, vector<40x64xbf16>, vector<40x64xf32> -> vector<40x64xf32>
    %92 = arith.mulf %91, %1 : vector<40x64xf32>
    %93 = vector.extract_strided_slice %92 {offsets = [0, 0], sizes = [10, 64], strides = [1, 1]} : vector<40x64xf32> to vector<10x64xf32>
    %94 = vector.extract_strided_slice %92 {offsets = [10, 0], sizes = [10, 64], strides = [1, 1]} : vector<40x64xf32> to vector<10x64xf32>
    %95 = arith.addf %93, %94 : vector<10x64xf32>
    %96 = vector.extract_strided_slice %92 {offsets = [20, 0], sizes = [10, 64], strides = [1, 1]} : vector<40x64xf32> to vector<10x64xf32>
    %97 = arith.addf %95, %96 : vector<10x64xf32>
    %98 = vector.extract_strided_slice %92 {offsets = [30, 0], sizes = [10, 64], strides = [1, 1]} : vector<40x64xf32> to vector<10x64xf32>
    %99 = arith.addf %97, %98 : vector<10x64xf32>
    %100 = arith.truncf %99 : vector<10x64xf32> to vector<10x64xbf16>
    %c0_50 = arith.constant 0 : index
    %c0_51 = arith.constant 0 : index
    %c0_52 = arith.constant 0 : index
    %101 = vector.load %arg13[%c0_50, %c0_51, %c0_52] : memref<2x64x64xbf16, #tpu.memory_space<vmem>>, vector<1x64x64xbf16>
    %102 = vector.shape_cast %101 : vector<1x64x64xbf16> to vector<64x64xbf16>
    %cst_53 = arith.constant dense<0.000000e+00> : vector<10x64xf32>
    %103 = tpu.matmul %100, %102, %cst_53 {dimension_numbers = #tpu.dot_dimension_numbers<[1], [0], [0], [1], [0, 0, 1, 1], [], []>} : vector<10x64xbf16>, vector<64x64xbf16>, vector<10x64xf32> -> vector<10x64xf32>
    %c0_54 = arith.constant 0 : index
    %c0_55 = arith.constant 0 : index
    %c0_56 = arith.constant 0 : index
    %104 = vector.load %arg14[%c0_54, %c0_55, %c0_56] : memref<2x1x64xf32, #tpu.memory_space<vmem>>, vector<1x1x64xf32>
    %105 = vector.shape_cast %104 : vector<1x1x64xf32> to vector<1x64xf32>
    %106 = vector.broadcast %105 : vector<1x64xf32> to vector<10x64xf32>
    %107 = arith.addf %103, %106 : vector<10x64xf32>
    %108 = arith.addf %26, %107 : vector<10x64xf32>
    %c0_57 = arith.constant 0 : index
    %c0_58 = arith.constant 0 : index
    %c0_59 = arith.constant 0 : index
    %109 = vector.load %arg15[%c0_57, %c0_58, %c0_59] : memref<2x1x64xf32, #tpu.memory_space<vmem>>, vector<1x1x64xf32>
    %110 = vector.shape_cast %109 : vector<1x1x64xf32> to vector<1x64xf32>
    %c0_60 = arith.constant 0 : index
    %c0_61 = arith.constant 0 : index
    %c0_62 = arith.constant 0 : index
    %111 = vector.load %arg16[%c0_60, %c0_61, %c0_62] : memref<2x1x64xf32, #tpu.memory_space<vmem>>, vector<1x1x64xf32>
    %112 = vector.shape_cast %111 : vector<1x1x64xf32> to vector<1x64xf32>
    %cst_63 = arith.constant dense<0.000000e+00> : vector<10xf32>
    %113 = vector.multi_reduction <add>, %108, %cst_63 [1] : vector<10x64xf32> to vector<10xf32>
    %114 = vector.shape_cast %113 : vector<10xf32> to vector<10x1xf32>
    %cst_64 = arith.constant 6.400000e+01 : f32
    %115 = vector.broadcast %cst_64 : f32 to vector<10x1xf32>
    %116 = arith.divf %114, %115 : vector<10x1xf32>
    %117 = vector.broadcast %116 : vector<10x1xf32> to vector<10x64xf32>
    %118 = arith.subf %108, %117 : vector<10x64xf32>
    %119 = arith.mulf %118, %118 : vector<10x64xf32>
    %cst_65 = arith.constant dense<0.000000e+00> : vector<10xf32>
    %120 = vector.multi_reduction <add>, %119, %cst_65 [1] : vector<10x64xf32> to vector<10xf32>
    %121 = vector.shape_cast %120 : vector<10xf32> to vector<10x1xf32>
    %cst_66 = arith.constant 6.400000e+01 : f32
    %122 = vector.broadcast %cst_66 : f32 to vector<10x1xf32>
    %123 = arith.divf %121, %122 : vector<10x1xf32>
    %cst_67 = arith.constant 9.99999974E-6 : f32
    %124 = vector.broadcast %cst_67 : f32 to vector<10x1xf32>
    %125 = arith.addf %123, %124 : vector<10x1xf32>
    %126 = math.rsqrt %125 : vector<10x1xf32>
    %127 = vector.broadcast %126 : vector<10x1xf32> to vector<10x64xf32>
    %128 = arith.mulf %118, %127 : vector<10x64xf32>
    %129 = vector.broadcast %110 : vector<1x64xf32> to vector<10x64xf32>
    %130 = arith.mulf %128, %129 : vector<10x64xf32>
    %131 = vector.broadcast %112 : vector<1x64xf32> to vector<10x64xf32>
    %132 = arith.addf %130, %131 : vector<10x64xf32>
    %133 = arith.truncf %132 : vector<10x64xf32> to vector<10x64xbf16>
    %c0_68 = arith.constant 0 : index
    %c0_69 = arith.constant 0 : index
    %c0_70 = arith.constant 0 : index
    %134 = vector.load %arg17[%c0_68, %c0_69, %c0_70] : memref<2x64x256xbf16, #tpu.memory_space<vmem>>, vector<1x64x256xbf16>
    %135 = vector.shape_cast %134 : vector<1x64x256xbf16> to vector<64x256xbf16>
    %cst_71 = arith.constant dense<0.000000e+00> : vector<10x256xf32>
    %136 = tpu.matmul %133, %135, %cst_71 {dimension_numbers = #tpu.dot_dimension_numbers<[1], [0], [0], [1], [0, 0, 1, 1], [], []>} : vector<10x64xbf16>, vector<64x256xbf16>, vector<10x256xf32> -> vector<10x256xf32>
    %c0_72 = arith.constant 0 : index
    %c0_73 = arith.constant 0 : index
    %c0_74 = arith.constant 0 : index
    %137 = vector.load %arg18[%c0_72, %c0_73, %c0_74] : memref<2x1x256xf32, #tpu.memory_space<vmem>>, vector<1x1x256xf32>
    %138 = vector.shape_cast %137 : vector<1x1x256xf32> to vector<1x256xf32>
    %139 = vector.broadcast %138 : vector<1x256xf32> to vector<10x256xf32>
    %140 = arith.addf %136, %139 : vector<10x256xf32>
    %cst_75 = arith.constant 1.702000e+00 : f32
    %141 = vector.broadcast %cst_75 : f32 to vector<10x256xf32>
    %142 = arith.mulf %141, %140 : vector<10x256xf32>
    %143 = arith.negf %142 : vector<10x256xf32>
    %144 = math.exp %143 : vector<10x256xf32>
    %cst_76 = arith.constant 1.000000e+00 : f32
    %145 = vector.broadcast %cst_76 : f32 to vector<10x256xf32>
    %146 = arith.addf %145, %144 : vector<10x256xf32>
    %147 = arith.divf %145, %146 : vector<10x256xf32>
    %148 = arith.mulf %140, %147 : vector<10x256xf32>
    %149 = arith.truncf %148 : vector<10x256xf32> to vector<10x256xbf16>
    %c0_77 = arith.constant 0 : index
    %c0_78 = arith.constant 0 : index
    %c0_79 = arith.constant 0 : index
    %150 = vector.load %arg19[%c0_77, %c0_78, %c0_79] : memref<2x256x64xbf16, #tpu.memory_space<vmem>>, vector<1x256x64xbf16>
    %151 = vector.shape_cast %150 : vector<1x256x64xbf16> to vector<256x64xbf16>
    %cst_80 = arith.constant dense<0.000000e+00> : vector<10x64xf32>
    %152 = tpu.matmul %149, %151, %cst_80 {dimension_numbers = #tpu.dot_dimension_numbers<[1], [0], [0], [1], [0, 0, 1, 1], [], []>} : vector<10x256xbf16>, vector<256x64xbf16>, vector<10x64xf32> -> vector<10x64xf32>
    %153 = arith.addf %108, %152 : vector<10x64xf32>
    %c0_81 = arith.constant 0 : index
    %c0_82 = arith.constant 0 : index
    %c0_83 = arith.constant 0 : index
    %154 = vector.load %arg20[%c0_81, %c0_82, %c0_83] : memref<2x1x64xf32, #tpu.memory_space<vmem>>, vector<1x1x64xf32>
    %155 = vector.shape_cast %154 : vector<1x1x64xf32> to vector<1x64xf32>
    %156 = vector.broadcast %155 : vector<1x64xf32> to vector<10x64xf32>
    %157 = arith.addf %153, %156 : vector<10x64xf32>
    %c1 = arith.constant 1 : index
    %c0_84 = arith.constant 0 : index
    %c0_85 = arith.constant 0 : index
    %158 = vector.load %arg5[%c1, %c0_84, %c0_85] : memref<2x1x64xf32, #tpu.memory_space<vmem>>, vector<1x1x64xf32>
    %159 = vector.shape_cast %158 : vector<1x1x64xf32> to vector<1x64xf32>
    %c1_86 = arith.constant 1 : index
    %c0_87 = arith.constant 0 : index
    %c0_88 = arith.constant 0 : index
    %160 = vector.load %arg6[%c1_86, %c0_87, %c0_88] : memref<2x1x64xf32, #tpu.memory_space<vmem>>, vector<1x1x64xf32>
    %161 = vector.shape_cast %160 : vector<1x1x64xf32> to vector<1x64xf32>
    %cst_89 = arith.constant dense<0.000000e+00> : vector<10xf32>
    %162 = vector.multi_reduction <add>, %157, %cst_89 [1] : vector<10x64xf32> to vector<10xf32>
    %163 = vector.shape_cast %162 : vector<10xf32> to vector<10x1xf32>
    %cst_90 = arith.constant 6.400000e+01 : f32
    %164 = vector.broadcast %cst_90 : f32 to vector<10x1xf32>
    %165 = arith.divf %163, %164 : vector<10x1xf32>
    %166 = vector.broadcast %165 : vector<10x1xf32> to vector<10x64xf32>
    %167 = arith.subf %157, %166 : vector<10x64xf32>
    %168 = arith.mulf %167, %167 : vector<10x64xf32>
    %cst_91 = arith.constant dense<0.000000e+00> : vector<10xf32>
    %169 = vector.multi_reduction <add>, %168, %cst_91 [1] : vector<10x64xf32> to vector<10xf32>
    %170 = vector.shape_cast %169 : vector<10xf32> to vector<10x1xf32>
    %cst_92 = arith.constant 6.400000e+01 : f32
    %171 = vector.broadcast %cst_92 : f32 to vector<10x1xf32>
    %172 = arith.divf %170, %171 : vector<10x1xf32>
    %cst_93 = arith.constant 9.99999974E-6 : f32
    %173 = vector.broadcast %cst_93 : f32 to vector<10x1xf32>
    %174 = arith.addf %172, %173 : vector<10x1xf32>
    %175 = math.rsqrt %174 : vector<10x1xf32>
    %176 = vector.broadcast %175 : vector<10x1xf32> to vector<10x64xf32>
    %177 = arith.mulf %167, %176 : vector<10x64xf32>
    %178 = vector.broadcast %159 : vector<1x64xf32> to vector<10x64xf32>
    %179 = arith.mulf %177, %178 : vector<10x64xf32>
    %180 = vector.broadcast %161 : vector<1x64xf32> to vector<10x64xf32>
    %181 = arith.addf %179, %180 : vector<10x64xf32>
    %182 = tpu.concatenate %181, %181, %181, %181 in 0 : vector<10x64xf32>, vector<10x64xf32>, vector<10x64xf32>, vector<10x64xf32> -> vector<40x64xf32>
    %183 = arith.truncf %182 : vector<40x64xf32> to vector<40x64xbf16>
    %c1_94 = arith.constant 1 : index
    %c0_95 = arith.constant 0 : index
    %c0_96 = arith.constant 0 : index
    %184 = vector.load %arg7[%c1_94, %c0_95, %c0_96] : memref<2x64x64xbf16, #tpu.memory_space<vmem>>, vector<1x64x64xbf16>
    %185 = vector.shape_cast %184 : vector<1x64x64xbf16> to vector<64x64xbf16>
    %cst_97 = arith.constant dense<0.000000e+00> : vector<40x64xf32>
    %186 = tpu.matmul %183, %185, %cst_97 {dimension_numbers = #tpu.dot_dimension_numbers<[1], [0], [0], [1], [0, 0, 1, 1], [], []>} : vector<40x64xbf16>, vector<64x64xbf16>, vector<40x64xf32> -> vector<40x64xf32>
    %c1_98 = arith.constant 1 : index
    %c0_99 = arith.constant 0 : index
    %c0_100 = arith.constant 0 : index
    %187 = vector.load %arg10[%c1_98, %c0_99, %c0_100] : memref<2x1x64xf32, #tpu.memory_space<vmem>>, vector<1x1x64xf32>
    %188 = vector.shape_cast %187 : vector<1x1x64xf32> to vector<1x64xf32>
    %189 = vector.broadcast %188 : vector<1x64xf32> to vector<40x64xf32>
    %190 = arith.addf %186, %189 : vector<40x64xf32>
    %c1_101 = arith.constant 1 : index
    %c0_102 = arith.constant 0 : index
    %c0_103 = arith.constant 0 : index
    %191 = vector.load %arg8[%c1_101, %c0_102, %c0_103] : memref<2x64x64xbf16, #tpu.memory_space<vmem>>, vector<1x64x64xbf16>
    %192 = vector.shape_cast %191 : vector<1x64x64xbf16> to vector<64x64xbf16>
    %cst_104 = arith.constant dense<0.000000e+00> : vector<40x64xf32>
    %193 = tpu.matmul %183, %192, %cst_104 {dimension_numbers = #tpu.dot_dimension_numbers<[1], [0], [0], [1], [0, 0, 1, 1], [], []>} : vector<40x64xbf16>, vector<64x64xbf16>, vector<40x64xf32> -> vector<40x64xf32>
    %c1_105 = arith.constant 1 : index
    %c0_106 = arith.constant 0 : index
    %c0_107 = arith.constant 0 : index
    %194 = vector.load %arg11[%c1_105, %c0_106, %c0_107] : memref<2x1x64xf32, #tpu.memory_space<vmem>>, vector<1x1x64xf32>
    %195 = vector.shape_cast %194 : vector<1x1x64xf32> to vector<1x64xf32>
    %196 = vector.broadcast %195 : vector<1x64xf32> to vector<40x64xf32>
    %197 = arith.addf %193, %196 : vector<40x64xf32>
    %c1_108 = arith.constant 1 : index
    %c0_109 = arith.constant 0 : index
    %c0_110 = arith.constant 0 : index
    %198 = vector.load %arg9[%c1_108, %c0_109, %c0_110] : memref<2x64x64xbf16, #tpu.memory_space<vmem>>, vector<1x64x64xbf16>
    %199 = vector.shape_cast %198 : vector<1x64x64xbf16> to vector<64x64xbf16>
    %cst_111 = arith.constant dense<0.000000e+00> : vector<40x64xf32>
    %200 = tpu.matmul %183, %199, %cst_111 {dimension_numbers = #tpu.dot_dimension_numbers<[1], [0], [0], [1], [0, 0, 1, 1], [], []>} : vector<40x64xbf16>, vector<64x64xbf16>, vector<40x64xf32> -> vector<40x64xf32>
    %c1_112 = arith.constant 1 : index
    %c0_113 = arith.constant 0 : index
    %c0_114 = arith.constant 0 : index
    %201 = vector.load %arg12[%c1_112, %c0_113, %c0_114] : memref<2x1x64xf32, #tpu.memory_space<vmem>>, vector<1x1x64xf32>
    %202 = vector.shape_cast %201 : vector<1x1x64xf32> to vector<1x64xf32>
    %203 = vector.broadcast %202 : vector<1x64xf32> to vector<40x64xf32>
    %204 = arith.addf %200, %203 : vector<40x64xf32>
    %205 = arith.mulf %190, %3 : vector<40x64xf32>
    %206 = arith.truncf %205 : vector<40x64xf32> to vector<40x64xbf16>
    %207 = arith.truncf %197 : vector<40x64xf32> to vector<40x64xbf16>
    %208 = arith.truncf %204 : vector<40x64xf32> to vector<40x64xbf16>
    %cst_115 = arith.constant dense<0.000000e+00> : vector<40x40xf32>
    %209 = tpu.matmul %206, %207, %cst_115 {dimension_numbers = #tpu.dot_dimension_numbers<[1], [1], [0], [0], [0, 0, 1, 0], [], []>} : vector<40x64xbf16>, vector<40x64xbf16>, vector<40x40xf32> -> vector<40x40xf32>
    %210 = arith.addf %209, %0 : vector<40x40xf32>
    %cst_116 = arith.constant dense<0xFF800000> : vector<40xf32>
    %211 = vector.multi_reduction <maximumf>, %210, %cst_116 [1] : vector<40x40xf32> to vector<40xf32>
    %212 = vector.shape_cast %211 : vector<40xf32> to vector<40x1xf32>
    %213 = vector.broadcast %212 : vector<40x1xf32> to vector<40x40xf32>
    %214 = arith.subf %210, %213 : vector<40x40xf32>
    %215 = math.exp %214 : vector<40x40xf32>
    %cst_117 = arith.constant dense<0.000000e+00> : vector<40xf32>
    %216 = vector.multi_reduction <add>, %215, %cst_117 [1] : vector<40x40xf32> to vector<40xf32>
    %217 = vector.shape_cast %216 : vector<40xf32> to vector<40x1xf32>
    %218 = tpu.reciprocal %217 {approx = true} : vector<40x1xf32> -> vector<40x1xf32>
    %219 = vector.broadcast %218 : vector<40x1xf32> to vector<40x40xf32>
    %220 = arith.mulf %215, %219 : vector<40x40xf32>
    %221 = arith.truncf %220 : vector<40x40xf32> to vector<40x40xbf16>
    %cst_118 = arith.constant dense<0.000000e+00> : vector<40x64xf32>
    %222 = tpu.matmul %221, %208, %cst_118 {dimension_numbers = #tpu.dot_dimension_numbers<[1], [0], [0], [1], [0, 0, 1, 1], [], []>} : vector<40x40xbf16>, vector<40x64xbf16>, vector<40x64xf32> -> vector<40x64xf32>
    %223 = arith.mulf %222, %1 : vector<40x64xf32>
    %224 = vector.extract_strided_slice %223 {offsets = [0, 0], sizes = [10, 64], strides = [1, 1]} : vector<40x64xf32> to vector<10x64xf32>
    %225 = vector.extract_strided_slice %223 {offsets = [10, 0], sizes = [10, 64], strides = [1, 1]} : vector<40x64xf32> to vector<10x64xf32>
    %226 = arith.addf %224, %225 : vector<10x64xf32>
    %227 = vector.extract_strided_slice %223 {offsets = [20, 0], sizes = [10, 64], strides = [1, 1]} : vector<40x64xf32> to vector<10x64xf32>
    %228 = arith.addf %226, %227 : vector<10x64xf32>
    %229 = vector.extract_strided_slice %223 {offsets = [30, 0], sizes = [10, 64], strides = [1, 1]} : vector<40x64xf32> to vector<10x64xf32>
    %230 = arith.addf %228, %229 : vector<10x64xf32>
    %231 = arith.truncf %230 : vector<10x64xf32> to vector<10x64xbf16>
    %c1_119 = arith.constant 1 : index
    %c0_120 = arith.constant 0 : index
    %c0_121 = arith.constant 0 : index
    %232 = vector.load %arg13[%c1_119, %c0_120, %c0_121] : memref<2x64x64xbf16, #tpu.memory_space<vmem>>, vector<1x64x64xbf16>
    %233 = vector.shape_cast %232 : vector<1x64x64xbf16> to vector<64x64xbf16>
    %cst_122 = arith.constant dense<0.000000e+00> : vector<10x64xf32>
    %234 = tpu.matmul %231, %233, %cst_122 {dimension_numbers = #tpu.dot_dimension_numbers<[1], [0], [0], [1], [0, 0, 1, 1], [], []>} : vector<10x64xbf16>, vector<64x64xbf16>, vector<10x64xf32> -> vector<10x64xf32>
    %c1_123 = arith.constant 1 : index
    %c0_124 = arith.constant 0 : index
    %c0_125 = arith.constant 0 : index
    %235 = vector.load %arg14[%c1_123, %c0_124, %c0_125] : memref<2x1x64xf32, #tpu.memory_space<vmem>>, vector<1x1x64xf32>
    %236 = vector.shape_cast %235 : vector<1x1x64xf32> to vector<1x64xf32>
    %237 = vector.broadcast %236 : vector<1x64xf32> to vector<10x64xf32>
    %238 = arith.addf %234, %237 : vector<10x64xf32>
    %239 = arith.addf %157, %238 : vector<10x64xf32>
    %c1_126 = arith.constant 1 : index
    %c0_127 = arith.constant 0 : index
    %c0_128 = arith.constant 0 : index
    %240 = vector.load %arg15[%c1_126, %c0_127, %c0_128] : memref<2x1x64xf32, #tpu.memory_space<vmem>>, vector<1x1x64xf32>
    %241 = vector.shape_cast %240 : vector<1x1x64xf32> to vector<1x64xf32>
    %c1_129 = arith.constant 1 : index
    %c0_130 = arith.constant 0 : index
    %c0_131 = arith.constant 0 : index
    %242 = vector.load %arg16[%c1_129, %c0_130, %c0_131] : memref<2x1x64xf32, #tpu.memory_space<vmem>>, vector<1x1x64xf32>
    %243 = vector.shape_cast %242 : vector<1x1x64xf32> to vector<1x64xf32>
    %cst_132 = arith.constant dense<0.000000e+00> : vector<10xf32>
    %244 = vector.multi_reduction <add>, %239, %cst_132 [1] : vector<10x64xf32> to vector<10xf32>
    %245 = vector.shape_cast %244 : vector<10xf32> to vector<10x1xf32>
    %cst_133 = arith.constant 6.400000e+01 : f32
    %246 = vector.broadcast %cst_133 : f32 to vector<10x1xf32>
    %247 = arith.divf %245, %246 : vector<10x1xf32>
    %248 = vector.broadcast %247 : vector<10x1xf32> to vector<10x64xf32>
    %249 = arith.subf %239, %248 : vector<10x64xf32>
    %250 = arith.mulf %249, %249 : vector<10x64xf32>
    %cst_134 = arith.constant dense<0.000000e+00> : vector<10xf32>
    %251 = vector.multi_reduction <add>, %250, %cst_134 [1] : vector<10x64xf32> to vector<10xf32>
    %252 = vector.shape_cast %251 : vector<10xf32> to vector<10x1xf32>
    %cst_135 = arith.constant 6.400000e+01 : f32
    %253 = vector.broadcast %cst_135 : f32 to vector<10x1xf32>
    %254 = arith.divf %252, %253 : vector<10x1xf32>
    %cst_136 = arith.constant 9.99999974E-6 : f32
    %255 = vector.broadcast %cst_136 : f32 to vector<10x1xf32>
    %256 = arith.addf %254, %255 : vector<10x1xf32>
    %257 = math.rsqrt %256 : vector<10x1xf32>
    %258 = vector.broadcast %257 : vector<10x1xf32> to vector<10x64xf32>
    %259 = arith.mulf %249, %258 : vector<10x64xf32>
    %260 = vector.broadcast %241 : vector<1x64xf32> to vector<10x64xf32>
    %261 = arith.mulf %259, %260 : vector<10x64xf32>
    %262 = vector.broadcast %243 : vector<1x64xf32> to vector<10x64xf32>
    %263 = arith.addf %261, %262 : vector<10x64xf32>
    %264 = arith.truncf %263 : vector<10x64xf32> to vector<10x64xbf16>
    %c1_137 = arith.constant 1 : index
    %c0_138 = arith.constant 0 : index
    %c0_139 = arith.constant 0 : index
    %265 = vector.load %arg17[%c1_137, %c0_138, %c0_139] : memref<2x64x256xbf16, #tpu.memory_space<vmem>>, vector<1x64x256xbf16>
    %266 = vector.shape_cast %265 : vector<1x64x256xbf16> to vector<64x256xbf16>
    %cst_140 = arith.constant dense<0.000000e+00> : vector<10x256xf32>
    %267 = tpu.matmul %264, %266, %cst_140 {dimension_numbers = #tpu.dot_dimension_numbers<[1], [0], [0], [1], [0, 0, 1, 1], [], []>} : vector<10x64xbf16>, vector<64x256xbf16>, vector<10x256xf32> -> vector<10x256xf32>
    %c1_141 = arith.constant 1 : index
    %c0_142 = arith.constant 0 : index
    %c0_143 = arith.constant 0 : index
    %268 = vector.load %arg18[%c1_141, %c0_142, %c0_143] : memref<2x1x256xf32, #tpu.memory_space<vmem>>, vector<1x1x256xf32>
    %269 = vector.shape_cast %268 : vector<1x1x256xf32> to vector<1x256xf32>
    %270 = vector.broadcast %269 : vector<1x256xf32> to vector<10x256xf32>
    %271 = arith.addf %267, %270 : vector<10x256xf32>
    %cst_144 = arith.constant 1.702000e+00 : f32
    %272 = vector.broadcast %cst_144 : f32 to vector<10x256xf32>
    %273 = arith.mulf %272, %271 : vector<10x256xf32>
    %274 = arith.negf %273 : vector<10x256xf32>
    %275 = math.exp %274 : vector<10x256xf32>
    %cst_145 = arith.constant 1.000000e+00 : f32
    %276 = vector.broadcast %cst_145 : f32 to vector<10x256xf32>
    %277 = arith.addf %276, %275 : vector<10x256xf32>
    %278 = arith.divf %276, %277 : vector<10x256xf32>
    %279 = arith.mulf %271, %278 : vector<10x256xf32>
    %280 = arith.truncf %279 : vector<10x256xf32> to vector<10x256xbf16>
    %c1_146 = arith.constant 1 : index
    %c0_147 = arith.constant 0 : index
    %c0_148 = arith.constant 0 : index
    %281 = vector.load %arg19[%c1_146, %c0_147, %c0_148] : memref<2x256x64xbf16, #tpu.memory_space<vmem>>, vector<1x256x64xbf16>
    %282 = vector.shape_cast %281 : vector<1x256x64xbf16> to vector<256x64xbf16>
    %cst_149 = arith.constant dense<0.000000e+00> : vector<10x64xf32>
    %283 = tpu.matmul %280, %282, %cst_149 {dimension_numbers = #tpu.dot_dimension_numbers<[1], [0], [0], [1], [0, 0, 1, 1], [], []>} : vector<10x256xbf16>, vector<256x64xbf16>, vector<10x64xf32> -> vector<10x64xf32>
    %284 = arith.addf %239, %283 : vector<10x64xf32>
    %c1_150 = arith.constant 1 : index
    %c0_151 = arith.constant 0 : index
    %c0_152 = arith.constant 0 : index
    %285 = vector.load %arg20[%c1_150, %c0_151, %c0_152] : memref<2x1x64xf32, #tpu.memory_space<vmem>>, vector<1x1x64xf32>
    %286 = vector.shape_cast %285 : vector<1x1x64xf32> to vector<1x64xf32>
    %287 = vector.broadcast %286 : vector<1x64xf32> to vector<10x64xf32>
    %288 = arith.addf %284, %287 : vector<10x64xf32>
    %289 = vector.extract_strided_slice %288 {offsets = [0, 0], sizes = [1, 64], strides = [1, 1]} : vector<10x64xf32> to vector<1x64xf32>
    %290 = vector.extract_strided_slice %288 {offsets = [5, 0], sizes = [1, 64], strides = [1, 1]} : vector<10x64xf32> to vector<1x64xf32>
    %291 = tpu.concatenate %289, %290 in 0 : vector<1x64xf32>, vector<1x64xf32> -> vector<2x64xf32>
    %c0_153 = arith.constant 0 : index
    %c0_154 = arith.constant 0 : index
    %292 = vector.load %arg21[%c0_153, %c0_154] : memref<1x64xf32, #tpu.memory_space<vmem>>, vector<1x64xf32>
    %c0_155 = arith.constant 0 : index
    %c0_156 = arith.constant 0 : index
    %293 = vector.load %arg22[%c0_155, %c0_156] : memref<1x64xf32, #tpu.memory_space<vmem>>, vector<1x64xf32>
    %cst_157 = arith.constant dense<0.000000e+00> : vector<2xf32>
    %294 = vector.multi_reduction <add>, %291, %cst_157 [1] : vector<2x64xf32> to vector<2xf32>
    %295 = vector.shape_cast %294 : vector<2xf32> to vector<2x1xf32>
    %cst_158 = arith.constant 6.400000e+01 : f32
    %296 = vector.broadcast %cst_158 : f32 to vector<2x1xf32>
    %297 = arith.divf %295, %296 : vector<2x1xf32>
    %298 = vector.broadcast %297 : vector<2x1xf32> to vector<2x64xf32>
    %299 = arith.subf %291, %298 : vector<2x64xf32>
    %300 = arith.mulf %299, %299 : vector<2x64xf32>
    %cst_159 = arith.constant dense<0.000000e+00> : vector<2xf32>
    %301 = vector.multi_reduction <add>, %300, %cst_159 [1] : vector<2x64xf32> to vector<2xf32>
    %302 = vector.shape_cast %301 : vector<2xf32> to vector<2x1xf32>
    %cst_160 = arith.constant 6.400000e+01 : f32
    %303 = vector.broadcast %cst_160 : f32 to vector<2x1xf32>
    %304 = arith.divf %302, %303 : vector<2x1xf32>
    %cst_161 = arith.constant 9.99999974E-6 : f32
    %305 = vector.broadcast %cst_161 : f32 to vector<2x1xf32>
    %306 = arith.addf %304, %305 : vector<2x1xf32>
    %307 = math.rsqrt %306 : vector<2x1xf32>
    %308 = vector.broadcast %307 : vector<2x1xf32> to vector<2x64xf32>
    %309 = arith.mulf %299, %308 : vector<2x64xf32>
    %310 = vector.broadcast %292 : vector<1x64xf32> to vector<2x64xf32>
    %311 = arith.mulf %309, %310 : vector<2x64xf32>
    %312 = vector.broadcast %293 : vector<1x64xf32> to vector<2x64xf32>
    %313 = arith.addf %311, %312 : vector<2x64xf32>
    %314 = arith.truncf %313 : vector<2x64xf32> to vector<2x64xbf16>
    %c0_162 = arith.constant 0 : index
    %c0_163 = arith.constant 0 : index
    %315 = vector.load %arg23[%c0_162, %c0_163] : memref<64x32xbf16, #tpu.memory_space<vmem>>, vector<64x32xbf16>
    %cst_164 = arith.constant dense<0.000000e+00> : vector<2x32xf32>
    %316 = tpu.matmul %314, %315, %cst_164 {dimension_numbers = #tpu.dot_dimension_numbers<[1], [0], [0], [1], [0, 0, 1, 1], [], []>} : vector<2x64xbf16>, vector<64x32xbf16>, vector<2x32xf32> -> vector<2x32xf32>
    %317 = arith.truncf %316 : vector<2x32xf32> to vector<2x32xbf16>
    %c0_165 = arith.constant 0 : index
    %c0_166 = arith.constant 0 : index
    %318 = vector.load %arg24[%c0_165, %c0_166] : memref<32x512xbf16, #tpu.memory_space<vmem>>, vector<32x512xbf16>
    %cst_167 = arith.constant dense<0.000000e+00> : vector<2x512xf32>
    %319 = tpu.matmul %317, %318, %cst_167 {dimension_numbers = #tpu.dot_dimension_numbers<[1], [0], [0], [1], [0, 0, 1, 1], [], []>} : vector<2x32xbf16>, vector<32x512xbf16>, vector<2x512xf32> -> vector<2x512xf32>
    %c0_168 = arith.constant 0 : index
    %c0_169 = arith.constant 0 : index
    %320 = vector.load %arg25[%c0_168, %c0_169] : memref<1x512xf32, #tpu.memory_space<vmem>>, vector<1x512xf32>
    %321 = vector.broadcast %320 : vector<1x512xf32> to vector<2x512xf32>
    %322 = arith.addf %319, %321 : vector<2x512xf32>
    %cst_170 = arith.constant 0.000000e+00 : f32
    %323 = vector.broadcast %cst_170 : f32 to vector<2x512xf32>
    %324 = arith.maximumf %322, %323 : vector<2x512xf32>
    %c0_171 = arith.constant 0 : index
    %c0_172 = arith.constant 0 : index
    %325 = vector.load %arg29[%c0_171, %c0_172] : memref<2x512xf32, #tpu.memory_space<vmem>>, vector<2x512xf32>
    tpu.vector_store %arg29[%c0_171, %c0_172], %324 {strides = array<i32>} : memref<2x512xf32, #tpu.memory_space<vmem>>, vector<2x512xf32>,
    %326 = arith.truncf %324 : vector<2x512xf32> to vector<2x512xbf16>
    %c0_173 = arith.constant 0 : index
    %c0_174 = arith.constant 0 : index
    %327 = vector.load %arg26[%c0_173, %c0_174] : memref<512x128xbf16, #tpu.memory_space<vmem>>, vector<512x128xbf16>
    %cst_175 = arith.constant dense<0.000000e+00> : vector<2x128xf32>
    %328 = tpu.matmul %326, %327, %cst_175 {dimension_numbers = #tpu.dot_dimension_numbers<[1], [0], [0], [1], [0, 0, 1, 1], [], []>} : vector<2x512xbf16>, vector<512x128xbf16>, vector<2x128xf32> -> vector<2x128xf32>
    %c0_176 = arith.constant 0 : index
    %c0_177 = arith.constant 0 : index
    %329 = vector.load %arg27[%c0_176, %c0_177] : memref<1x128xf32, #tpu.memory_space<vmem>>, vector<1x128xf32>
    %330 = vector.broadcast %329 : vector<1x128xf32> to vector<2x128xf32>
    %331 = arith.addf %328, %330 : vector<2x128xf32>
    %c0_178 = arith.constant 0 : index
    %c0_179 = arith.constant 0 : index
    %332 = vector.load %arg28[%c0_178, %c0_179] : memref<2x128xf32, #tpu.memory_space<vmem>>, vector<2x128xf32>
    tpu.vector_store %arg28[%c0_178, %c0_179], %331 {strides = array<i32>} : memref<2x128xf32, #tpu.memory_space<vmem>>, vector<2x128xf32>,
    return
  }
}

</mosaic_0001>

<bundles_post_ra>
// kernel: forward.1
= control target key start
LH: loop header
LB: loop body
LE: loop exit
PB: predicated region body
PF: predicated region fallthrough
CT: control target
= control target key end

     0   :  { %s4005_s6 = smov 1   ;;  %s4006_s10 = smov 2   ;;  %s4717_s0 = inlined_call_operand.smem [shape: u32[30], index: -1, kind: input, shape index: {}] }
   0x1   :  { %s4048_s5 = sld [smem:[%s4717_s0]]   ;;  %s4007_s14 = smov 3  }
   0x2   :  { %s4053_s9 = sld [smem:[%s4717_s0 + %s4005_s6]]   ;;  %s4008_s18 = smov 4  }
   0x3   :  { %s4058_s13 = sld [smem:[%s4717_s0 + %s4006_s10]]   ;;  %s4009_s22 = smov 5  }
   0x4   :  { %s4063_s17 = sld [smem:[%s4717_s0 + %s4007_s14]]   ;;  %s4010_s26 = smov 6  }
   0x5   :  { %s4068_s21 = sld [smem:[%s4717_s0 + %s4008_s18]]   ;;  %s4011_s30 = smov 7  }
   0x6   :  { %s4073_s25 = sld [smem:[%s4717_s0 + %s4009_s22]]   ;;  %s4012_s4 = smov 8  }
   0x7   :  { %s4078_s29 = sld [smem:[%s4717_s0 + %s4010_s26]]   ;;  %s4013_s10 = smov 9  }
   0x8   :  { %s4083_s3 = sld [smem:[%s4717_s0 + %s4011_s30]]   ;;  %s4014_s15 = smov 10  }
   0x9   :  { %s4088_s8 = sld [smem:[%s4717_s0 + %s4012_s4]]   ;;  %s4015_s20 = smov 11  }
   0xa   :  { %s4093_s14 = sld [smem:[%s4717_s0 + %s4013_s10]]   ;;  %s4016_s26 = smov 12  }
   0xb   :  { %s4098_s19 = sld [smem:[%s4717_s0 + %s4014_s15]]   ;;  %s4017_s1 = smov 13  }
   0xc   :  { %s4103_s24 = sld [smem:[%s4717_s0 + %s4015_s20]]   ;;  %s4018_s7 = smov 14  }
   0xd   :  { %s4108_s30 = sld [smem:[%s4717_s0 + %s4016_s26]]   ;;  %s4019_s15 = smov 15  }
   0xe   :  { %s4113_s6 = sld [smem:[%s4717_s0 + %s4017_s1]]   ;;  %s4020_s22 = smov 16  }
   0xf   :  { %s4118_s12 = sld [smem:[%s4717_s0 + %s4018_s7]]   ;;  %s4021_s28 = smov 17  }
  0x10   :  { %s4123_s20 = sld [smem:[%s4717_s0 + %s4019_s15]]   ;;  %s4022_s7 = smov 18  }
  0x11   :  { %s4128_s27 = sld [smem:[%s4717_s0 + %s4020_s22]]   ;;  %s4023_s15 = smov 19  }
  0x12   :  { %s4133_s4 = sld [smem:[%s4717_s0 + %s4021_s28]]   ;;  %s4024_s22 = smov 20  }
  0x13   :  { %s4025_s28 = smov 21  }
  0x15   :  { %4727 = sst [smem:[#allocation8_spill]] %s4118_s12 }
  0x16   :  { %4728 = sst [smem:[#allocation9_spill]] %s4123_s20 }
  0x17   :  { %4729 = sst [smem:[#allocation10_spill]] %s4128_s27 }
  0x18   :  { %4730 = sst [smem:[#allocation11_spill]] %s4133_s4 }
  0x19   :  { %s4138_s12 = sld [smem:[%s4717_s0 + %s4022_s7]]   ;;  %s4026_s7 = smov 22  }
  0x1a   :  { %s4143_s20 = sld [smem:[%s4717_s0 + %s4023_s15]]   ;;  %s4027_s15 = smov 23  }
  0x1b   :  { %s4148_s27 = sld [smem:[%s4717_s0 + %s4024_s22]]   ;;  %s4028_s22 = smov 24  }
  0x1c   :  { %s4153_s4 = sld [smem:[%s4717_s0 + %s4025_s28]]   ;;  %s4029_s28 = smov 25  }
  0x1f   :  { %4731 = sst [smem:[#allocation12_spill]] %s4138_s12 }
  0x20   :  { %4732 = sst [smem:[#allocation13_spill]] %s4143_s20 }
  0x21   :  { %4733 = sst [smem:[#allocation14_spill]] %s4148_s27 }
  0x22   :  { %4734 = sst [smem:[#allocation15_spill]] %s4153_s4 }
  0x23   :  { %s4158_s12 = sld [smem:[%s4717_s0 + %s4026_s7]]   ;;  %s4030_s7 = smov 26  }
  0x24   :  { %s4163_s20 = sld [smem:[%s4717_s0 + %s4027_s15]]   ;;  %s4031_s15 = smov 27  }
  0x25   :  { %s4168_s27 = sld [smem:[%s4717_s0 + %s4028_s22]]   ;;  %s4032_s22 = smov 28  }
  0x26   :  { %s4173_s4 = sld [smem:[%s4717_s0 + %s4029_s28]]   ;;  %s4033_s28 = smov 29  }
  0x29   :  { %4735 = sst [smem:[#allocation16_spill]] %s4158_s12 }
  0x2a   :  { %4736 = sst [smem:[#allocation17_spill]] %s4163_s20 }
  0x2b   :  { %4737 = sst [smem:[#allocation18_spill]] %s4168_s27 }
  0x2c   :  { %4738 = sst [smem:[#allocation19_spill]] %s4173_s4 }
  0x2d   :  { %s4178_s12 = sld [smem:[%s4717_s0 + %s4030_s7]]  }
  0x2e   :  { %s4183_s20 = sld [smem:[%s4717_s0 + %s4031_s15]]  }
  0x2f   :  { %s4188_s27 = sld [smem:[%s4717_s0 + %s4032_s22]]  }
  0x30   :  { %s4193_s4 = sld [smem:[%s4717_s0 + %s4033_s28]]  }
  0x31   :  { %65 = vsyncpa [#allocation3], 0  ;;  %v139_v0 = vld [vmem:[%s4048_s5] sm:$0xff]  ;;  %vm143_vm0 = vcmask 523264   ;;  %v140_v1 = vld [vmem:[%s4048_s5 + $0x8] sm:$0x3] }
  0x32   :  { %vm147_vm1 = vcmask 517120   ;;  %v144_v2 = vsel %vm143_vm0, %v139_v0, 0.0 }
  0x33   :  { %v148_v3 = vsel %vm147_vm1, %v140_v1, 0.0  ;;  %145 = vadd.xlane.f32.xlu0 %v144_v2 }
  0x37   :  { %149 = vadd.xlane.f32.xlu0 %v148_v3 }
  0x38   :  { %66 = vsyncpa [#allocation5], 0  ;;  %v3016_v21 = vld [vmem:[%s4063_s17] ss:$0 sm:$0xff]  ;;  %v4034_v44 = vmov 0.0   ;;  %v3724_v45 = vld [vmem:[%s4083_s3 + $0x8] sm:$0xff]  }
  0x39   :  { %v3017_v23 = vld [vmem:[%s4068_s21] ss:$0 sm:$0xff]  ;;  %3459 = vmatprep.subr.bf16.mxu0 %v4034_v44  ;;  %3479 = vmatprep.subr.bf16.mxu1 %v4034_v44  ;;  %v3725_v46 = vld [vmem:[%s4088_s8 + $0x8] sm:$0xff]   ;;  %v3726_v47 = vld [vmem:[%s4083_s3 + $0x10] sm:$0xff]   ;;  %vm4035_vm2 = vmmov 0   ;;  %vm234_vm3 = vcmask 1041408  }
  0x3a   :  { %v3722_v42 = vld [vmem:[%s4083_s3] sm:$0xff]   ;;  %v3727_v48 = vld [vmem:[%s4088_s8 + $0x10] sm:$0xff]   ;;  %v3728_v49 = vld [vmem:[%s4083_s3 + $0x18] sm:$0xff]   ;;  %3467 = vmatprep.mubr.msk.bf16.mxu0 %vm4035_vm2, %v4034_v44  ;;  %3487 = vmatprep.mubr.msk.bf16.mxu1 %vm4035_vm2, %v4034_v44  ;;  %vm240_vm4 = vcmask 1043456   ;;  %vm246_vm5 = vcmask 1045504   ;;  %vm640_vm6 = vcmask 326656  }
  0x3b   :  { %v3723_v43 = vld [vmem:[%s4088_s8] sm:$0xff]   ;;  %3460 = vmatpush3.bf16.msra.mxu0 %v3722_v42  ;;  %v3729_v50 = vld [vmem:[%s4088_s8 + $0x18] sm:$0xff]   ;;  %s4739_s0 = sld [smem:[#allocation8_spill]]  ;;  %s4740_s5 = sld [smem:[#allocation11_spill]]  ;;  %vm2320_vm7 = vcmask 1040384   ;;  %vm2498_vm8 = vcmask 261120  }
  0x3c   :  { %3480 = vmatpush3.bf16.msra.mxu1 %v3723_v43  ;;  %3461 = vmatprep.subr.bf16.mxu0 %v4034_v44  ;;  %v3018_v58 = vld [vmem:[%s4073_s25] ss:$0 sm:$0xff]  ;;  %s4742_s17 = sld [smem:[#allocation10_spill]]  ;;  %s4743_s21 = sld [smem:[#allocation13_spill]] }
  0x3d   :  { %3481 = vmatprep.subr.bf16.mxu1 %v4034_v44  ;;  %v3019_v60 = vld [vmem:[%s4078_s29] ss:$0 sm:$0xff]  ;;  %s4744_s7 = sld [smem:[#allocation12_spill]]  ;;  %s4745_s10 = sld [smem:[#allocation14_spill]] }
  0x3f   :  { %3462 = vmatpush3.bf16.msra.mxu0 %v3724_v45 }
  0x40   :  { %3482 = vmatpush3.bf16.msra.mxu1 %v3725_v46  ;;  %3463 = vmatprep.subr.bf16.mxu0 %v4034_v44  ;;  %v4301_v46 = vld [vmem:[%s4058_s13 + $0x10] sm:$0xff] }
  0x41   :  { %3483 = vmatprep.subr.bf16.mxu1 %v4034_v44 }
  0x43   :  { %3464 = vmatpush3.bf16.msra.mxu0 %v3726_v47  ;;  %v4304_v47 = vld [vmem:[%s4058_s13 + $0x18] sm:$0xff] }
  0x44   :  { %3484 = vmatpush3.bf16.msra.mxu1 %v3727_v48  ;;  %3465 = vmatprep.subr.bf16.mxu0 %v4034_v44 }
  0x45   :  { %3485 = vmatprep.subr.bf16.mxu1 %v4034_v44 }
  0x47   :  { %3466 = vmatpush3.bf16.msra.mxu0 %v3728_v49 }
  0x48   :  { %3486 = vmatpush3.bf16.msra.mxu1 %v3729_v50  ;;  %3499 = vmatprep.subr.bf16.mxu0 %v4034_v44 }
  0x49   :  { %3519 = vmatprep.subr.bf16.mxu1 %v4034_v44 }
  0xc0   :  { %v146_v4 = vpop.xlane.xlu0 %145 }
  0xc1   :  { %v152_v5 = vmul.f32 0.015625, %v146_v4 }
  0xc3   :  { %v154_v6 = vsub.f32 %v139_v0, %v152_v5 }
  0xc4   :  { %v150_v7 = vpop.xlane.xlu0 %149 }
  0xc5   :  { %v153_v8 = vmul.f32 0.015625, %v150_v7  ;;  %v156_v9 = vmul.f32 %v154_v6, %v154_v6 }
  0xc7   :  { %v155_v10 = vsub.f32 %v140_v1, %v153_v8  ;;  %v158_v11 = vsel %vm143_vm0, %v156_v9, 0.0  ;;  %v3730_v9 = vld [vmem:[%s4093_s14] sm:$0xff]  }
  0xc8   :  { %159 = vadd.xlane.f32.xlu1 %v158_v11 }
  0xc9   :  { %v157_v12 = vmul.f32 %v155_v10, %v155_v10 }
  0xcb   :  { %v161_v13 = vsel %vm147_vm1, %v157_v12, 0.0 }
  0xcc   :  { %162 = vadd.xlane.f32.xlu1 %v161_v13  ;;  %v3731_v13 = vld [vmem:[%s4093_s14 + $0x8] sm:$0xff]  }
 0x155   :  { %v160_v14 = vpop.xlane.xlu1 %159 }
 0x156   :  { %v164_v15 = vmul.f32 0.015625, %v160_v14 }
 0x158   :  { %v166_v16 = vadd.f32 1e-05, %v164_v15 }
 0x159   :  { %v163_v17 = vpop.xlane.xlu1 %162 }
 0x15a   :  { %3858 = vrsqrt.f32 %v166_v16  ;;  %v165_v18 = vmul.f32 0.015625, %v163_v17  ;;  %v3732_v17 = vld [vmem:[%s4093_s14 + $0x10] sm:$0xff]  }
 0x15c   :  { %v167_v19 = vadd.f32 1e-05, %v165_v18 }
 0x15e   :  { %3860 = vrsqrt.f32 %v167_v19  ;;  %v3733_v19 = vld [vmem:[%s4093_s14 + $0x18] sm:$0xff]  }
 0x164   :  { %v3859_v20 = vpop.eup %3858 }
 0x165   :  { %v170_v22 = vmul.f32 %v3859_v20, %v154_v6 }
 0x167   :  { %v178_v24 = vmul.f32 %v3016_v21, %v170_v22  ;;  %v4281_v22 = vld [vmem:[%s4058_s13] sm:$0xff] }
 0x168   :  { %v3861_v25 = vpop.eup %3860 }
 0x169   :  { %v4203_v26 = vadd.f32 %v3017_v23, %v178_v24  ;;  %v171_v27 = vmul.f32 %v3861_v25, %v155_v10  ;;  %v4287_v24 = vld [vmem:[%s4058_s13 + $0x8] sm:$0xff] }
 0x16b   :  { %v190_v28 = vsel %vm143_vm0, %v4203_v26, 0.0  ;;  %v179_v29 = vmul.f32 %v3016_v21, %v171_v27  ;;  %v3028_v27 = vld [vmem:[%s4103_s24] ss:$0 sm:$0xff] }
 0x16c   :  { %191 = vadd.xlane.f32.xlu0 %v190_v28 }
 0x16d   :  { %v4207_v30 = vadd.f32 %v3017_v23, %v179_v29  ;;  %v4284_v23 = vld [vmem:[%s4098_s19] ss:$0 sm:$0xff]  ;;  %v4291_v29 = vmul.f32 0.25, %v4281_v22 }
 0x16f   :  { %v193_v31 = vsel %vm147_vm1, %v4207_v30, 0.0 }
 0x170   :  { %194 = vadd.xlane.f32.xlu1 %v193_v31 }
 0x1f9   :  { %v192_v32 = vpop.xlane.xlu0 %191 }
 0x1fa   :  { %v196_v33 = vmul.f32 0.015625, %v192_v32 }
 0x1fc   :  { %v198_v34 = vsub.f32 %v4203_v26, %v196_v33 }
 0x1fd   :  { %v195_v35 = vpop.xlane.xlu1 %194 }
 0x1fe   :  { %v197_v36 = vmul.f32 0.015625, %v195_v35  ;;  %v200_v37 = vmul.f32 %v198_v34, %v198_v34 }
 0x200   :  { %v199_v38 = vsub.f32 %v4207_v30, %v197_v36  ;;  %v202_v39 = vsel %vm143_vm0, %v200_v37, 0.0 }
 0x201   :  { %203 = vadd.xlane.f32.xlu0 %v202_v39 }
 0x202   :  { %v201_v40 = vmul.f32 %v199_v38, %v199_v38 }
 0x204   :  { %v205_v41 = vsel %vm147_vm1, %v201_v40, 0.0 }
 0x205   :  { %206 = vadd.xlane.f32.xlu1 %v205_v41 }
 0x28e   :  { %v204_v51 = vpop.xlane.xlu0 %203 }
 0x28f   :  { %v208_v52 = vmul.f32 0.015625, %v204_v51 }
 0x291   :  { %v210_v53 = vadd.f32 1e-05, %v208_v52  ;;  %v4308_v52 = vmul.f32 0.25, %v4301_v46 }
 0x292   :  { %v207_v54 = vpop.xlane.xlu1 %206 }
 0x293   :  { %3862 = vrsqrt.f32 %v210_v53  ;;  %v209_v55 = vmul.f32 0.015625, %v207_v54 }
 0x295   :  { %v211_v56 = vadd.f32 1e-05, %v209_v55 }
 0x297   :  { %3864 = vrsqrt.f32 %v211_v56  ;;  %v4312_v56 = vmul.f32 0.25, %v4304_v47 }
 0x29d   :  { %v3863_v57 = vpop.eup %3862 }
 0x29e   :  { %v214_v59 = vmul.f32 %v3863_v57, %v198_v34  ;;  %v4295_v34 = vmul.f32 0.25, %v4287_v24 }
 0x2a0   :  { %v222_v61 = vmul.f32 %v3018_v58, %v214_v59 }
 0x2a1   :  { %v3865_v62 = vpop.eup %3864 }
 0x2a2   :  { %v215_v63 = vmul.f32 %v3865_v62, %v199_v38  ;;  %v230_v0 = vadd.f32 %v3019_v60, %v222_v61 }
 0x2a4   :  { %v223_v1 = vmul.f32 %v3018_v58, %v215_v63  ;;  %v235_v3 = vrot.slane %v230_v0, 6  ;;  %v241_v8 = vrot.slane %v230_v0, 4  ;;  %v247_v12 = vrot.slane %v230_v0, 2 }
 0x2a6   :  { %v231_v2 = vadd.f32 %v3019_v60, %v223_v1 }
 0x2a8   :  { %v252_v4 = vsel %vm234_vm3, %v231_v2, %v235_v3  ;;  %v236_v5 = vrot.slane %v231_v2, 6  ;;  %v242_v6 = vrot.slane %v231_v2, 4  ;;  %v248_v18 = vrot.slane %v231_v2, 2 }
 0x2a9   :  { %v255_v7 = vpack.c.bf16 %v252_v4, %v230_v0 }
 0x2aa   :  { %v237_v10 = vsel %vm234_vm3, %v235_v3, %v236_v5  ;;  %v243_v11 = vsel %vm240_vm4, %v241_v8, %v242_v6  ;;  %v249_v20 = vsel %vm246_vm5, %v247_v12, %v248_v18 }
 0x2ab   :  { %3468 = vmatmul.mubr.msk.bf16.vlgmr.msra.gmra.mrb[0].mxu0 %vm143_vm0, %v255_v7  ;;  %3488 = vmatmul.mubr.msk.bf16.vlgmr.msra.gmra.mrb[0].mxu1 %vm143_vm0, %v255_v7  ;;  %v253_v14 = vsel %vm240_vm4, %v237_v10, %v241_v8  ;;  %v254_v15 = vsel %vm246_vm5, %v243_v11, %v247_v12  ;;  %v257_v21 = vpack.c.bf16 %v249_v20, %v249_v20 }
 0x2ac   :  { %3471 = vmatprep.mubr.msk.bf16.mxu0 %vm4035_vm2, %v4034_v44  ;;  %3491 = vmatprep.mubr.msk.bf16.mxu1 %vm4035_vm2, %v4034_v44  ;;  %v256_v16 = vpack.c.bf16 %v254_v15, %v253_v14 }
 0x2ad   :  { %3500 = vmatpush3.bf16.msra.mxu0 %v3730_v9 }
 0x2ae   :  { %3501 = vmatprep.subr.bf16.mxu0 %v4034_v44 }
 0x2b1   :  { %3502 = vmatpush3.bf16.msra.mxu0 %v3731_v13 }
 0x2b2   :  { %3503 = vmatprep.subr.bf16.mxu0 %v4034_v44 }
 0x2b3   :  { %3472 = vmatmul.mubr.msk.bf16.gmra.mrb[4].mxu0 %vm143_vm0, %v256_v16  ;;  %3492 = vmatmul.mubr.msk.bf16.gmra.mrb[4].mxu1 %vm143_vm0, %v256_v16 }
 0x2b4   :  { %3475 = vmatprep.mubr.msk.bf16.mxu0 %vm4035_vm2, %v4034_v44  ;;  %3495 = vmatprep.mubr.msk.bf16.mxu1 %vm4035_vm2, %v4034_v44 }
 0x2b5   :  { %3504 = vmatpush3.bf16.msra.mxu0 %v3732_v17 }
 0x2b6   :  { %3505 = vmatprep.subr.bf16.mxu0 %v4034_v44 }
 0x2b9   :  { %3506 = vmatpush3.bf16.msra.mxu0 %v3733_v19 }
 0x2ba   :  { %3537 = vmatprep.subr.bf16.mxu0 %v4034_v44 }
 0x2bb   :  { %3476 = vmatmul.mubr.msk.bf16.gmra.mrb[8].mxu0 %vm143_vm0, %v257_v21  ;;  %3496 = vmatmul.mubr.msk.bf16.gmra.mrb[8].mxu1 %vm143_vm0, %v257_v21 }
 0x2bc   :  { %3507 = vmatprep.mubr.msk.bf16.mxu0 %vm4035_vm2, %v4034_v44  ;;  %3525 = vmatprep.mubr.msk.bf16.mxu1 %vm4035_vm2, %v4034_v44 }
 0x2c3   :  { %3508 = vmatmul.mubr.msk.bf16.vlgmr.msra.gmra.mrb[12].mxu0 %vm143_vm0, %v255_v7 }
 0x2c4   :  { %3511 = vmatprep.mubr.msk.bf16.mxu0 %vm4035_vm2, %v4034_v44 }
 0x2cb   :  { %3512 = vmatmul.mubr.msk.bf16.gmra.mrb[16].mxu0 %vm143_vm0, %v256_v16  ;;  %v3036_v16 = vld [vmem:[%s4108_s30] ss:$0 sm:$0xff] }
 0x2cc   :  { %3515 = vmatprep.mubr.msk.bf16.mxu0 %vm4035_vm2, %v4034_v44 }
 0x2d3   :  { %3516 = vmatmul.mubr.msk.bf16.gmra.mrb[20].mxu0 %vm143_vm0, %v257_v21 }
 0x2d4   :  { %3543 = vmatprep.mubr.msk.bf16.mxu0 %vm4035_vm2, %v4034_v44 }
 0x37e   :  { %v340_v25 = vpop.f32.mrb[0].mxu0  ;;  %v435_v28 = vpop.f32.mrb[0].mxu1 }
 0x37f   :  { %v341_v31 = vadd.f32 %v4284_v23, %v340_v25  ;;  %v3469_v32 = vpop.f32.mrb[1].mxu0  ;;  %v3489_v33 = vpop.f32.mrb[1].mxu1  ;;  %v436_v37 = vadd.f32 %v3028_v27, %v435_v28 }
 0x380   :  { %v343_v35 = vpop.f32.mrb[2].mxu0  ;;  %v438_v36 = vpop.f32.mrb[2].mxu1  ;;  %v4328_v32 = vld [vmem:[%s4058_s13 + $0x20] sm:$0xff] }
 0x381   :  { %v344_v38 = vadd.f32 %v4284_v23, %v343_v35  ;;  %v439_v39 = vadd.f32 %v3028_v27, %v438_v36  ;;  %v3470_v40 = vpop.f32.mrb[3].mxu0  ;;  %v3490_v41 = vpop.f32.mrb[3].mxu1  ;;  %v552_v42 = vmul.f32 %v341_v31, %v4291_v29 }
 0x383   :  { %v553_v43 = vmul.f32 %v344_v38, %v4295_v34  ;;  %v560_v45 = vpack.c.bf16 %v439_v39, %v436_v37  ;;  %v4331_v38 = vmul.f32 0.25, %v4328_v32 }
 0x385   :  { %v557_v48 = vpack.c.bf16 %v553_v43, %v552_v42  ;;  %v576_v49 = vsel %vm143_vm0, %v560_v45, 0 }
 0x386   :  { %v348_v50 = vpop.f32.mrb[4].mxu0  ;;  %v443_v51 = vpop.f32.mrb[4].mxu1  ;;  %3520 = vmatpush3.bf16.xpose.msra.mxu1 %v576_v49 }
 0x387   :  { %v349_v53 = vadd.f32 %v4284_v23, %v348_v50  ;;  %v3473_v54 = vpop.f32.mrb[5].mxu0  ;;  %v3493_v55 = vpop.f32.mrb[5].mxu1  ;;  %3521 = vmatprep.subr.bf16.mxu1 %v4034_v44  ;;  %v444_v59 = vadd.f32 %v3028_v27, %v443_v51 }
 0x388   :  { %v351_v57 = vpop.f32.mrb[6].mxu0  ;;  %v446_v58 = vpop.f32.mrb[6].mxu1  ;;  %v4347_v55 = vld [vmem:[%s4053_s9 + $0x8] sm:$0xff] }
 0x389   :  { %v352_v60 = vadd.f32 %v4284_v23, %v351_v57  ;;  %v447_v61 = vadd.f32 %v3028_v27, %v446_v58  ;;  %v3474_v62 = vpop.f32.mrb[7].mxu0  ;;  %v3494_v63 = vpop.f32.mrb[7].mxu1  ;;  %v554_v0 = vmul.f32 %v349_v53, %v4308_v52  ;;  %v4344_v53 = vld [vmem:[%s4053_s9] sm:$0xff] }
 0x38b   :  { %v555_v1 = vmul.f32 %v352_v60, %v4312_v56  ;;  %v561_v2 = vpack.c.bf16 %v447_v61, %v444_v59 }
 0x38d   :  { %v558_v3 = vpack.c.bf16 %v555_v1, %v554_v0  ;;  %v579_v4 = vsel %vm143_vm0, %v561_v2, 0  ;;  %v4354_v0 = vld [vmem:[%s4053_s9 + $0x10] sm:$0xff]  ;;  %v4357_v2 = vld [vmem:[%s4053_s9 + $0x18] sm:$0xff] }
 0x38e   :  { %v356_v5 = vpop.f32.mrb[8].mxu0  ;;  %v451_v6 = vpop.f32.mrb[8].mxu1  ;;  %3522 = vmatpush3.bf16.xpose.msra.mxu1 %v579_v4 }
 0x38f   :  { %v452_v7 = vadd.f32 %v3028_v27, %v451_v6  ;;  %v3477_v8 = vpop.f32.mrb[9].mxu0  ;;  %v3497_v9 = vpop.f32.mrb[9].mxu1  ;;  %3523 = vmatprep.subr.bf16.mxu1 %v4034_v44  ;;  %v357_v39 = vadd.f32 %v4284_v23, %v356_v5 }
 0x390   :  { %v359_v10 = vpop.f32.mrb[10].mxu0  ;;  %v454_v11 = vpop.f32.mrb[10].mxu1 }
 0x391   :  { %v562_v12 = vpack.c.bf16 %v452_v7, %v452_v7  ;;  %v3478_v13 = vpop.f32.mrb[11].mxu0  ;;  %v3498_v14 = vpop.f32.mrb[11].mxu1  ;;  %v556_v42 = vmul.f32 %v357_v39, %v4331_v38  ;;  %v4364_v10 = vld [vmem:[%s4053_s9 + $0x20] sm:$0xff]  ;;  %s4741_s9 = sld [smem:[#allocation9_spill]] }
 0x393   :  { %v582_v15 = vsel %vm143_vm0, %v562_v12, 0  ;;  %v559_v23 = vpack.c.bf16 %v556_v42, %v556_v42 }
 0x396   :  { %v530_v17 = vpop.f32.mrb[12].mxu0  ;;  %3524 = vmatpush3.bf16.xpose.msra.mxu1 %v582_v15 }
 0x397   :  { %v3509_v18 = vpop.f32.mrb[13].mxu0  ;;  %3555 = vmatprep.subr.bf16.mxu1 %v4034_v44  ;;  %v531_v20 = vadd.f32 %v3036_v16, %v530_v17 }
 0x398   :  { %v533_v19 = vpop.f32.mrb[14].mxu0 }
 0x399   :  { %v534_v21 = vadd.f32 %v3036_v16, %v533_v19  ;;  %v3510_v25 = vpop.f32.mrb[15].mxu0 }
 0x39b   :  { %v563_v27 = vpack.c.bf16 %v534_v21, %v531_v20 }
 0x39d   :  { %3526 = vmatmul.mubr.msk.bf16.vlgmr.msra.gmra.mrb[12].mxu1 %vm143_vm0, %v557_v48  ;;  %3538 = vmatpush3.bf16.msra.mxu0 %v563_v27 }
 0x39e   :  { %v538_v28 = vpop.f32.mrb[16].mxu0  ;;  %3529 = vmatprep.mubr.msk.bf16.mxu1 %vm4035_vm2, %v4034_v44  ;;  %3539 = vmatprep.subr.bf16.mxu0 %v4034_v44 }
 0x39f   :  { %v3513_v31 = vpop.f32.mrb[17].mxu0  ;;  %v539_v35 = vadd.f32 %v3036_v16, %v538_v28 }
 0x3a0   :  { %v541_v33 = vpop.f32.mrb[18].mxu0 }
 0x3a1   :  { %v542_v36 = vadd.f32 %v3036_v16, %v541_v33  ;;  %v3514_v37 = vpop.f32.mrb[19].mxu0 }
 0x3a3   :  { %v564_v40 = vpack.c.bf16 %v542_v36, %v539_v35 }
 0x3a5   :  { %3530 = vmatmul.mubr.msk.bf16.gmra.mrb[16].mxu1 %vm143_vm0, %v558_v3  ;;  %3540 = vmatpush3.bf16.msra.mxu0 %v564_v40 }
 0x3a6   :  { %v546_v41 = vpop.f32.mrb[20].mxu0  ;;  %3541 = vmatprep.subr.bf16.mxu0 %v4034_v44  ;;  %3533 = vmatprep.mubr.msk.bf16.mxu1 %vm4035_vm2, %v4034_v44 }
 0x3a7   :  { %v547_v43 = vadd.f32 %v3036_v16, %v546_v41  ;;  %v3517_v45 = vpop.f32.mrb[21].mxu0 }
 0x3a8   :  { %v549_v48 = vpop.f32.mrb[22].mxu0 }
 0x3a9   :  { %v565_v49 = vpack.c.bf16 %v547_v43, %v547_v43  ;;  %v3518_v50 = vpop.f32.mrb[23].mxu0 }
 0x3ab   :  { %v709_v51 = vsel %vm240_vm4, %v565_v49, 0 }
 0x3ac   :  { %3542 = vmatpush3.bf16.msra.mxu0 %v709_v51 }
 0x3ad   :  { %3534 = vmatmul.mubr.msk.bf16.gmra.mrb[20].mxu1 %vm143_vm0, %v559_v23 }
 0x3ae   :  { %3563 = vmatprep.mubr.msk.bf16.mxu1 %vm4035_vm2, %v4034_v44 }
 0x470   :  { %v618_v54 = vpop.f32.mrb[12].mxu1 }
 0x471   :  { %v619_v57 = vadd.f32 %v618_v54, %v4344_v53  ;;  %v3527_v58 = vpop.f32.mrb[13].mxu1 }
 0x472   :  { %v621_v59 = vpop.f32.mrb[14].mxu1 }
 0x473   :  { %v622_v60 = vadd.f32 %v621_v59, %v4347_v55  ;;  %v3528_v61 = vpop.f32.mrb[15].mxu1  ;;  %v641_v62 = vsel %vm640_vm6, %v619_v57, -inf }
 0x474   :  { %642 = vmax.xlane.f32.xlu0 %v641_v62 }
 0x475   :  { %v644_v63 = vsel %vm640_vm6, %v622_v60, -inf }
 0x476   :  { %645 = vmax.xlane.f32.xlu1 %v644_v63 }
 0x478   :  { %v626_v1 = vpop.f32.mrb[16].mxu1 }
 0x479   :  { %v627_v3 = vadd.f32 %v626_v1, %v4354_v0  ;;  %v3531_v4 = vpop.f32.mrb[17].mxu1 }
 0x47a   :  { %v629_v5 = vpop.f32.mrb[18].mxu1 }
 0x47b   :  { %v630_v6 = vadd.f32 %v629_v5, %v4357_v2  ;;  %v3532_v7 = vpop.f32.mrb[19].mxu1  ;;  %v647_v8 = vsel %vm640_vm6, %v627_v3, -inf }
 0x47c   :  { %648 = vmax.xlane.f32.xlu0 %v647_v8 }
 0x47d   :  { %v650_v9 = vsel %vm640_vm6, %v630_v6, -inf }
 0x47e   :  { %651 = vmax.xlane.f32.xlu1 %v650_v9 }
 0x480   :  { %v634_v11 = vpop.f32.mrb[20].mxu1 }
 0x481   :  { %v635_v12 = vadd.f32 %v634_v11, %v4364_v10  ;;  %v3535_v13 = vpop.f32.mrb[21].mxu1 }
 0x482   :  { %v637_v14 = vpop.f32.mrb[22].mxu1 }
 0x483   :  { %v3536_v15 = vpop.f32.mrb[23].mxu1  ;;  %v653_v16 = vsel %vm640_vm6, %v635_v12, -inf  ;;  %v3734_v14 = vld [vmem:[%s4113_s6] sm:$0xff]  }
 0x484   :  { %654 = vmax.xlane.f32.xlu0 %v653_v16  ;;  %3556 = vmatpush3.bf16.msra.mxu1 %v3734_v14  ;;  %v3735_v15 = vld [vmem:[%s4113_s6 + $0x8] sm:$0xff]   ;;  %v3736_v16 = vld [vmem:[%s4113_s6 + $0x10] sm:$0xff]  }
 0x485   :  { %3557 = vmatprep.subr.bf16.mxu1 %v4034_v44 }
 0x488   :  { %3558 = vmatpush3.bf16.msra.mxu1 %v3735_v15 }
 0x489   :  { %3559 = vmatprep.subr.bf16.mxu1 %v4034_v44 }
 0x48c   :  { %3560 = vmatpush3.bf16.msra.mxu1 %v3736_v16 }
 0x48d   :  { %3561 = vmatprep.subr.bf16.mxu1 %v4034_v44 }
 0x501   :  { %v643_v17 = vpop.xlane.xlu0 %642 }
 0x502   :  { %v656_v18 = vsub.f32 %v619_v57, %v643_v17  ;;  %v3737_v17 = vld [vmem:[%s4113_s6 + $0x18] sm:$0xff]  }
 0x503   :  { %v646_v19 = vpop.xlane.xlu1 %645  ;;  %3562 = vmatpush3.bf16.msra.mxu1 %v3737_v17 }
 0x504   :  { %v661_v20 = vmul.f32 1.442695, %v656_v18  ;;  %v657_v21 = vsub.f32 %v622_v60, %v646_v19 }
 0x506   :  { %3866 = vpow2.f32 %v661_v20  ;;  %v663_v25 = vmul.f32 1.442695, %v657_v21 }
 0x508   :  { %3868 = vpow2.f32 %v663_v25 }
 0x509   :  { %v649_v27 = vpop.xlane.xlu0 %648 }
 0x50a   :  { %v658_v28 = vsub.f32 %v627_v3, %v649_v27 }
 0x50b   :  { %v652_v31 = vpop.xlane.xlu1 %651 }
 0x50c   :  { %v665_v33 = vmul.f32 1.442695, %v658_v28  ;;  %v659_v35 = vsub.f32 %v630_v6, %v652_v31 }
 0x50e   :  { %3870 = vpow2.f32 %v665_v33  ;;  %v667_v36 = vmul.f32 1.442695, %v659_v35 }
 0x510   :  { %v3867_v37 = vpop.eup %3866  ;;  %3872 = vpow2.f32 %v667_v36 }
 0x511   :  { %v655_v39 = vpop.xlane.xlu0 %654  ;;  %v671_v40 = vsel %vm640_vm6, %v3867_v37, 0.0 }
 0x512   :  { %v3869_v41 = vpop.eup %3868  ;;  %v660_v42 = vsub.f32 %v635_v12, %v655_v39  ;;  %672 = vadd.xlane.f32.xlu1 %v671_v40 }
 0x513   :  { %v674_v43 = vsel %vm640_vm6, %v3869_v41, 0.0 }
 0x514   :  { %v669_v45 = vmul.f32 1.442695, %v660_v42  ;;  %675 = vadd.xlane.f32.xlu0 %v674_v43 }
 0x516   :  { %3874 = vpow2.f32 %v669_v45 }
 0x518   :  { %v3871_v48 = vpop.eup %3870 }
 0x519   :  { %v677_v49 = vsel %vm640_vm6, %v3871_v48, 0.0 }
 0x51a   :  { %v3873_v50 = vpop.eup %3872  ;;  %678 = vadd.xlane.f32.xlu1 %v677_v49 }
 0x51b   :  { %v680_v23 = vsel %vm640_vm6, %v3873_v50, 0.0 }
 0x51c   :  { %681 = vadd.xlane.f32.xlu0 %v680_v23 }
 0x520   :  { %v3875_v51 = vpop.eup %3874 }
 0x521   :  { %v683_v54 = vsel %vm640_vm6, %v3875_v51, 0.0 }
 0x522   :  { %684 = vadd.xlane.f32.xlu1 %v683_v54 }
 0x59f   :  { %v673_v57 = vpop.xlane.xlu1 %672 }
 0x5a0   :  { %3876 = vrcp.f32 %v673_v57 }
 0x5a1   :  { %v676_v58 = vpop.xlane.xlu0 %675 }
 0x5a2   :  { %3878 = vrcp.f32 %v676_v58 }
 0x5a7   :  { %v679_v59 = vpop.xlane.xlu1 %678 }
 0x5a8   :  { %3880 = vrcp.f32 %v679_v59 }
 0x5a9   :  { %v682_v60 = vpop.xlane.xlu0 %681 }
 0x5aa   :  { %v3877_v61 = vpop.eup %3876  ;;  %3882 = vrcp.f32 %v682_v60 }
 0x5ab   :  { %v691_v63 = vmul.f32 %v3877_v61, %v3867_v37 }
 0x5ac   :  { %v3879_v62 = vpop.eup %3878 }
 0x5ad   :  { %v692_v1 = vmul.f32 %v3879_v62, %v3869_v41  ;;  %v3050_v62 = vld [vmem:[%s4739_s0] ss:$0 sm:$0xff] }
 0x5af   :  { %v696_v3 = vpack.c.bf16 %v692_v1, %v691_v63  ;;  %v685_v4 = vpop.xlane.xlu1 %684 }
 0x5b0   :  { %3884 = vrcp.f32 %v685_v4 }
 0x5b1   :  { %3544 = vmatmul.mubr.msk.bf16.vlgmr.msra.gmra.mrb[24].mxu0 %vm640_vm6, %v696_v3 }
 0x5b2   :  { %v3881_v5 = vpop.eup %3880  ;;  %3547 = vmatprep.mubr.msk.bf16.mxu0 %vm4035_vm2, %v4034_v44 }
 0x5b3   :  { %v693_v7 = vmul.f32 %v3881_v5, %v3871_v48 }
 0x5b4   :  { %v3883_v6 = vpop.eup %3882 }
 0x5b5   :  { %v694_v8 = vmul.f32 %v3883_v6, %v3873_v50 }
 0x5b7   :  { %v697_v9 = vpack.c.bf16 %v694_v8, %v693_v7 }
 0x5b9   :  { %3548 = vmatmul.mubr.msk.bf16.gmra.mrb[28].mxu0 %vm640_vm6, %v697_v9 }
 0x5ba   :  { %v3885_v11 = vpop.eup %3884  ;;  %3551 = vmatprep.mubr.msk.bf16.mxu0 %vm4035_vm2, %v4034_v44 }
 0x5bb   :  { %v695_v12 = vmul.f32 %v3885_v11, %v3875_v51 }
 0x5bd   :  { %v698_v13 = vpack.c.bf16 %v695_v12, %v695_v12 }
 0x5c1   :  { %3552 = vmatmul.mubr.msk.bf16.gmra.mrb[32].mxu0 %vm640_vm6, %v698_v13 }
 0x684   :  { %v745_v18 = vpop.f32.mrb[24].mxu0 }
 0x685   :  { %v3545_v19 = vpop.f32.mrb[25].mxu0  ;;  %v767_v40 = vmul.f32 %v745_v18, %v4281_v22 }
 0x686   :  { %v748_v20 = vpop.f32.mrb[26].mxu0  ;;  %v3740_v19 = vld [vmem:[%s4740_s5 + $0x4] ss:$8 sps:$4 sm:$0xff]  }
 0x687   :  { %v3546_v21 = vpop.f32.mrb[27].mxu0  ;;  %v768_v25 = vmul.f32 %v748_v20, %v4287_v24  ;;  %v3738_v20 = vld [vmem:[%s4740_s5] ss:$8 sps:$4 sm:$0xff]   ;;  %991 = vmatprep.subr.bf16.mxu1 %v3740_v19 }
 0x688   :  { %v3743_v21 = vld [vmem:[%s4740_s5 + $0x14] ss:$8 sps:$4 sm:$0xff]  }
 0x689   :  { %v774_v35 = vrot.slane %v768_v25, 2 }
 0x68c   :  { %v753_v27 = vpop.f32.mrb[28].mxu0 }
 0x68d   :  { %v769_v28 = vmul.f32 %v753_v27, %v4301_v46  ;;  %v3549_v31 = vpop.f32.mrb[29].mxu0  ;;  %v3746_v27 = vld [vmem:[%s4740_s5 + $0x24] ss:$8 sps:$4 sm:$0xff]  }
 0x68e   :  { %v756_v33 = vpop.f32.mrb[30].mxu0  ;;  %v3747_v31 = vld [vmem:[%s4740_s5 + $0x30] ss:$8 sps:$4 sm:$0xff]  }
 0x68f   :  { %v775_v36 = vrot.slane %v769_v28, 2  ;;  %v770_v37 = vmul.f32 %v756_v33, %v4304_v47  ;;  %v3550_v39 = vpop.f32.mrb[31].mxu0  ;;  %v782_v43 = vrot.slane %v769_v28, 4  ;;  %v3744_v28 = vld [vmem:[%s4740_s5 + $0x20] ss:$8 sps:$4 sm:$0xff]  }
 0x690   :  { %v3749_v33 = vld [vmem:[%s4740_s5 + $0x34] ss:$8 sps:$4 sm:$0xff]  }
 0x691   :  { %v776_v41 = vsel %vm246_vm5, %v774_v35, %v775_v36  ;;  %v780_v42 = vadd.f32 %v775_v36, %v768_v25  ;;  %v783_v45 = vrot.slane %v770_v37, 4  ;;  %v790_v47 = vrot.slane %v770_v37, 6  ;;  %v3741_v25 = vld [vmem:[%s4740_s5 + $0x10] ss:$8 sps:$4 sm:$0xff]  }
 0x692   :  { %v779_v48 = vadd.f32 %v776_v41, %v767_v40  ;;  %v4036_v35 = vmov 0  }
 0x693   :  { %v784_v24 = vsel %vm240_vm4, %v782_v43, %v783_v45  ;;  %v788_v49 = vadd.f32 %v783_v45, %v780_v42  ;;  %v3056_v45 = vld [vmem:[%s4741_s9] ss:$0 sm:$0xff] }
 0x694   :  { %v787_v46 = vadd.f32 %v784_v24, %v779_v48  ;;  %v761_v50 = vpop.f32.mrb[32].mxu0 }
 0x695   :  { %v771_v23 = vmul.f32 %v761_v50, %v4328_v32  ;;  %v3553_v51 = vpop.f32.mrb[33].mxu0  ;;  %v3057_v50 = vld [vmem:[%s4742_s17] ss:$0 sm:$0xff] }
 0x696   :  { %v764_v54 = vpop.f32.mrb[34].mxu0 }
 0x697   :  { %v791_v57 = vrot.slane %v771_v23, 6  ;;  %v3554_v58 = vpop.f32.mrb[35].mxu0 }
 0x698   :  { %v3751_v58 = vld [vmem:[%s4743_s21] sm:$0xff]  }
 0x699   :  { %v792_v22 = vsel %vm234_vm3, %v790_v47, %v791_v57  ;;  %v796_v59 = vadd.f32 %v791_v57, %v788_v49  ;;  %v3750_v57 = vld [vmem:[%s4743_s21 + $0x40] sm:$0xff]  }
 0x69a   :  { %v795_v60 = vadd.f32 %v792_v22, %v787_v46  ;;  %3328 = vmatprep.subr.bf16.mxu0 %v3750_v57  ;;  %v3752_v22 = vld [vmem:[%s4743_s21 + $0x48] sm:$0xff]  }
 0x69b   :  { %3329 = vmatpush3.bf16.msra.mxu0 %v3751_v58 }
 0x69c   :  { %v797_v61 = vpack.c.bf16 %v796_v59, %v795_v60  ;;  %v3753_v59 = vld [vmem:[%s4743_s21 + $0x8] sm:$0xff]   ;;  %3330 = vmatprep.subr.bf16.mxu0 %v3752_v22  ;;  %v3754_v60 = vld [vmem:[%s4743_s21 + $0x50] sm:$0xff]  }
 0x69e   :  { %3564 = vmatmul.mubr.msk.bf16.vlgmr.msra.gmra.mrb[24].mxu1 %vm143_vm0, %v797_v61  ;;  %v3755_v61 = vld [vmem:[%s4743_s21 + $0x10] sm:$0xff]  }
 0x69f   :  { %992 = vmatpush1.bf16.msra.mxu1 %v3738_v20  ;;  %1023 = vmatprep.mubr.bf16.mxu1 %v4036_v35 }
 0x6a0   :  { %993 = vmatprep.subr.bf16.mxu1 %v3743_v21  ;;  %3331 = vmatpush3.bf16.msra.mxu0 %v3753_v59 }
 0x6a1   :  { %3332 = vmatprep.subr.bf16.mxu0 %v3754_v60 }
 0x6a3   :  { %994 = vmatpush1.bf16.msra.mxu1 %v3741_v25 }
 0x6a4   :  { %995 = vmatprep.subr.bf16.mxu1 %v3746_v27  ;;  %3333 = vmatpush3.bf16.msra.mxu0 %v3755_v61 }
 0x6a7   :  { %996 = vmatpush1.bf16.msra.mxu1 %v3744_v28 }
 0x6a8   :  { %997 = vmatprep.subr.bf16.mxu1 %v3749_v33 }
 0x6ab   :  { %998 = vmatpush1.bf16.msra.mxu1 %v3747_v31 }
 0x6ac   :  { %3567 = vmatprep.subr.bf16.mxu1 %v4034_v44 }
 0x771   :  { %v874_v63 = vpop.f32.mrb[24].mxu1 }
 0x772   :  { %v875_v1 = vadd.f32 %v3050_v62, %v874_v63  ;;  %v3565_v3 = vpop.f32.mrb[25].mxu1  ;;  %v3757_v63 = vld [vmem:[%s4743_s21 + $0x18] sm:$0xff]  }
 0x773   :  { %v877_v4 = vpop.f32.mrb[26].mxu1  ;;  %v3759_v3 = vld [vmem:[%s4743_s21 + $0x20] sm:$0xff]  }
 0x774   :  { %v4398_v5 = vadd.f32 %v875_v1, %v4203_v26  ;;  %v878_v32 = vadd.f32 %v3050_v62, %v877_v4  ;;  %v3566_v6 = vpop.f32.mrb[27].mxu1  ;;  %v3756_v62 = vld [vmem:[%s4743_s21 + $0x58] sm:$0xff]   ;;  %v3758_v1 = vld [vmem:[%s4743_s21 + $0x60] sm:$0xff]   ;;  %v3760_v4 = vld [vmem:[%s4743_s21 + $0x68] sm:$0xff]  }
 0x775   :  { %3334 = vmatprep.subr.bf16.mxu0 %v3756_v62  ;;  %v3762_v6 = vld [vmem:[%s4743_s21 + $0x70] sm:$0xff]  }
 0x776   :  { %v4401_v7 = vadd.f32 %v878_v32, %v4207_v30  ;;  %v885_v8 = vsel %vm143_vm0, %v4398_v5, 0.0  ;;  %3335 = vmatpush3.bf16.msra.mxu0 %v3757_v63  ;;  %v3761_v32 = vld [vmem:[%s4743_s21 + $0x28] sm:$0xff]  }
 0x777   :  { %886 = vadd.xlane.f32.xlu0 %v885_v8  ;;  %3336 = vmatprep.subr.bf16.mxu0 %v3758_v1  ;;  %v3763_v8 = vld [vmem:[%s4743_s21 + $0x30] sm:$0xff]  }
 0x778   :  { %v888_v9 = vsel %vm147_vm1, %v4401_v7, 0.0 }
 0x779   :  { %889 = vadd.xlane.f32.xlu1 %v888_v9  ;;  %v3764_v9 = vld [vmem:[%s4743_s21 + $0x78] sm:$0xff]  }
 0x77a   :  { %3337 = vmatpush3.bf16.msra.mxu0 %v3759_v3 }
 0x77b   :  { %3338 = vmatprep.subr.bf16.mxu0 %v3760_v4 }
 0x77e   :  { %3339 = vmatpush3.bf16.msra.mxu0 %v3761_v32  ;;  %v3087_v32 = vld [vmem:[%s4745_s10] ss:$0 sm:$0xff] }
 0x77f   :  { %3340 = vmatprep.subr.bf16.mxu0 %v3762_v6 }
 0x782   :  { %3341 = vmatpush3.bf16.msra.mxu0 %v3763_v8 }
 0x783   :  { %3342 = vmatprep.subr.bf16.mxu0 %v3764_v9 }
 0x804   :  { %v887_v11 = vpop.xlane.xlu0 %886 }
 0x805   :  { %v891_v12 = vmul.f32 0.015625, %v887_v11  ;;  %v3765_v11 = vld [vmem:[%s4743_s21 + $0x38] sm:$0xff]  }
 0x806   :  { %v890_v26 = vpop.xlane.xlu1 %889  ;;  %3343 = vmatpush3.bf16.msra.mxu0 %v3765_v11 }
 0x807   :  { %v893_v13 = vsub.f32 %v4398_v5, %v891_v12  ;;  %v892_v14 = vmul.f32 0.015625, %v890_v26  ;;  %3587 = vmatprep.subr.bf16.mxu0 %v4034_v44  ;;  %v938_v12 = vlaneseq }
 0x809   :  { %v894_v30 = vsub.f32 %v4401_v7, %v892_v14  ;;  %v895_v15 = vmul.f32 %v893_v13, %v893_v13  ;;  %v4443_v26 = vshrl.u32 %v938_v12, 7  ;;  %v936_v14 = vld [vmem:[%s4744_s7] sm:$0x3] }
 0x80b   :  { %v897_v16 = vsel %vm143_vm0, %v895_v15, 0.0  ;;  %v896_v17 = vmul.f32 %v894_v30, %v894_v30 }
 0x80c   :  { %898 = vadd.xlane.f32.xlu0 %v897_v16 }
 0x80d   :  { %v900_v18 = vsel %vm147_vm1, %v896_v17, 0.0 }
 0x80e   :  { %901 = vadd.xlane.f32.xlu1 %v900_v18 }
 0x899   :  { %v899_v36 = vpop.xlane.xlu0 %898 }
 0x89a   :  { %v903_v37 = vmul.f32 0.015625, %v899_v36 }
 0x89b   :  { %v902_v39 = vpop.xlane.xlu1 %901 }
 0x89c   :  { %v905_v40 = vadd.f32 1e-05, %v903_v37  ;;  %v904_v41 = vmul.f32 0.015625, %v902_v39 }
 0x89e   :  { %3886 = vrsqrt.f32 %v905_v40  ;;  %v906_v42 = vadd.f32 1e-05, %v904_v41 }
 0x8a0   :  { %3888 = vrsqrt.f32 %v906_v42 }
 0x8a8   :  { %v3887_v43 = vpop.eup %3886 }
 0x8a9   :  { %v909_v48 = vmul.f32 %v3887_v43, %v893_v13  ;;  %v4446_v13 = vsub.s32 0, %v4443_v26 }
 0x8aa   :  { %v3889_v24 = vpop.eup %3888 }
 0x8ab   :  { %v917_v49 = vmul.f32 %v3056_v45, %v909_v48  ;;  %v910_v46 = vmul.f32 %v3889_v24, %v894_v30  ;;  %v4450_v30 = vsub.s32 1, %v4443_v26  ;;  %v941_v15 = vrot.slane %v936_v14, %v4446_v13 }
 0x8ad   :  { %v918_v23 = vmul.f32 %v3056_v45, %v910_v46  ;;  %v925_v51 = vadd.f32 %v3057_v50, %v917_v49  ;;  %v945_v16 = vrot.slane %v936_v14, %v4450_v30 }
 0x8af   :  { %v926_v54 = vadd.f32 %v3057_v50, %v918_v23 }
 0x8b1   :  { %v927_v47 = vpack.c.bf16 %v926_v54, %v925_v51 }
 0x8b3   :  { %3066 = vmatmul.mubr.msk.bf16.vlgmr.msra.gmra.mrb[28].mxu1 %vm143_vm0, %v927_v47 }
 0x8b4   :  { %3575 = vmatprep.mubr.msk.bf16.mxu1 %vm4035_vm2, %v4034_v44 }
 0x986   :  { %v1025_v17 = vpop.f32.mrb[28].mxu1 }
 0x987   :  { %v1026_v18 = vadd.f32 %v1025_v17, %v941_v15  ;;  %v1027_v19 = vpop.f32.mrb[29].mxu1 }
 0x988   :  { %v1028_v20 = vadd.f32 %v1027_v19, %v945_v16  ;;  %v1029_v21 = vpop.f32.mrb[30].mxu1 }
 0x989   :  { %v3067_v25 = vmul.f32 -1.702, %v1026_v18  ;;  %v1030_v27 = vadd.f32 %v1029_v21, %v941_v15  ;;  %v1031_v28 = vpop.f32.mrb[31].mxu1 }
 0x98a   :  { %v3068_v31 = vmul.f32 -1.702, %v1028_v20  ;;  %v1032_v33 = vadd.f32 %v1031_v28, %v945_v16 }
 0x98b   :  { %v1042_v36 = vmul.f32 1.442695, %v3067_v25  ;;  %v3069_v37 = vmul.f32 -1.702, %v1030_v27 }
 0x98c   :  { %v1044_v39 = vmul.f32 1.442695, %v3068_v31  ;;  %v3070_v40 = vmul.f32 -1.702, %v1032_v33  ;;  %v3766_v31 = vld [vmem:[%s4083_s3 + $0x20] sm:$0xff]  }
 0x98d   :  { %3890 = vpow2.f32 %v1042_v36  ;;  %v1046_v41 = vmul.f32 1.442695, %v3069_v37  ;;  %3568 = vmatpush3.bf16.msra.mxu1 %v3766_v31  ;;  %v3768_v36 = vld [vmem:[%s4083_s3 + $0x28] sm:$0xff]  }
 0x98e   :  { %3892 = vpow2.f32 %v1044_v39  ;;  %v1048_v42 = vmul.f32 1.442695, %v3070_v40  ;;  %3569 = vmatprep.subr.bf16.mxu1 %v4034_v44  ;;  %v3769_v37 = vld [vmem:[%s4088_s8 + $0x28] sm:$0xff]   ;;  %v3770_v39 = vld [vmem:[%s4083_s3 + $0x30] sm:$0xff]  }
 0x98f   :  { %3894 = vpow2.f32 %v1046_v41  ;;  %v3771_v40 = vld [vmem:[%s4088_s8 + $0x30] sm:$0xff]   ;;  %v3772_v41 = vld [vmem:[%s4083_s3 + $0x38] sm:$0xff]   ;;  %s4749_s3 = sld [smem:[#allocation16_spill]] }
 0x990   :  { %3896 = vpow2.f32 %v1048_v42  ;;  %v3773_v42 = vld [vmem:[%s4088_s8 + $0x38] sm:$0xff]  }
 0x991   :  { %3570 = vmatpush3.bf16.msra.mxu1 %v3768_v36 }
 0x992   :  { %3571 = vmatprep.subr.bf16.mxu1 %v4034_v44 }
 0x995   :  { %3572 = vmatpush3.bf16.msra.mxu1 %v3770_v39 }
 0x996   :  { %3573 = vmatprep.subr.bf16.mxu1 %v4034_v44 }
 0x997   :  { %v3891_v43 = vpop.eup %3890 }
 0x998   :  { %v3893_v45 = vpop.eup %3892  ;;  %v1050_v48 = vadd.f32 1.0, %v3891_v43 }
 0x999   :  { %v3895_v24 = vpop.eup %3894  ;;  %v1051_v49 = vadd.f32 1.0, %v3893_v45  ;;  %3574 = vmatpush3.bf16.msra.mxu1 %v3772_v41 }
 0x99a   :  { %v3897_v46 = vpop.eup %3896  ;;  %3898 = vrcp.f32 %v1050_v48  ;;  %v1052_v50 = vadd.f32 1.0, %v3895_v24  ;;  %3607 = vmatprep.subr.bf16.mxu1 %v4034_v44 }
 0x99b   :  { %3900 = vrcp.f32 %v1051_v49  ;;  %v1053_v23 = vadd.f32 1.0, %v3897_v46 }
 0x99c   :  { %3902 = vrcp.f32 %v1052_v50 }
 0x99d   :  { %3904 = vrcp.f32 %v1053_v23  ;;  %v3090_v23 = vld [vmem:[%s4073_s25 + $0x1] ss:$0 sm:$0xff]  ;;  %s4747_s25 = sld [smem:[#allocation18_spill]] }
 0x9a4   :  { %v3899_v51 = vpop.eup %3898 }
 0x9a5   :  { %v3901_v54 = vpop.eup %3900  ;;  %v1062_v58 = vmul.f32 %v3899_v51, %v1026_v18 }
 0x9a6   :  { %v3903_v47 = vpop.eup %3902  ;;  %v1063_v59 = vmul.f32 %v3901_v54, %v1028_v20 }
 0x9a7   :  { %v3905_v57 = vpop.eup %3904  ;;  %v1064_v22 = vmul.f32 %v3903_v47, %v1030_v27  ;;  %v3091_v47 = vld [vmem:[%s4078_s29 + $0x1] ss:$0 sm:$0xff]  ;;  %s4748_s29 = sld [smem:[#allocation15_spill]] }
 0x9a8   :  { %v1065_v60 = vmul.f32 %v3905_v57, %v1032_v33  ;;  %v3767_v33 = vld [vmem:[%s4088_s8 + $0x20] sm:$0xff]   ;;  %s4750_s8 = sld [smem:[#allocation19_spill]] }
 0x9a9   :  { %v1066_v61 = vpack.c.bf16 %v1064_v22, %v1062_v58 }
 0x9aa   :  { %v1067_v62 = vpack.c.bf16 %v1065_v60, %v1063_v59 }
 0x9ac   :  { %1228 = vmatprep.mubr.bf16.mxu0 %v1067_v62 }
 0x9ad   :  { %1229 = vmatmul.mubr.bf16.vlgmr.msra.gmra.mrb[36].mxu0 %v1066_v61 }
 0x9ae   :  { %3595 = vmatprep.mubr.msk.bf16.mxu0 %vm4035_vm2, %v4034_v44  ;;  %3588 = vmatpush3.bf16.msra.mxu0 %v3767_v33 }
 0x9af   :  { %3589 = vmatprep.subr.bf16.mxu0 %v4034_v44 }
 0x9b2   :  { %3590 = vmatpush3.bf16.msra.mxu0 %v3769_v37 }
 0x9b3   :  { %3591 = vmatprep.subr.bf16.mxu0 %v4034_v44 }
 0x9b6   :  { %3592 = vmatpush3.bf16.msra.mxu0 %v3771_v40 }
 0x9b7   :  { %3593 = vmatprep.subr.bf16.mxu0 %v4034_v44 }
 0x9ba   :  { %3594 = vmatpush3.bf16.msra.mxu0 %v3773_v42 }
 0x9bb   :  { %3627 = vmatprep.subr.bf16.mxu0 %v4034_v44 }
 0xa80   :  { %v3344_v63 = vpop.f32.mrb[36].mxu0 }
 0xa81   :  { %v3345_v1 = vpop.f32.mrb[37].mxu0 }
 0xa82   :  { %v3346_v3 = vadd.f32 %v3345_v1, %v3344_v63  ;;  %v3347_v4 = vpop.f32.mrb[38].mxu0 }
 0xa83   :  { %v3348_v6 = vpop.f32.mrb[39].mxu0 }
 0xa84   :  { %v1237_v8 = vadd.f32 %v3346_v3, %v4398_v5  ;;  %v3349_v9 = vadd.f32 %v3348_v6, %v3347_v4 }
 0xa86   :  { %v4458_v11 = vadd.f32 %v3087_v32, %v1237_v8  ;;  %v1238_v12 = vadd.f32 %v3349_v9, %v4401_v7 }
 0xa88   :  { %v4461_v14 = vadd.f32 %v3087_v32, %v1238_v12  ;;  %v1252_v15 = vsel %vm143_vm0, %v4458_v11, 0.0  ;;  %v3774_v32 = vld [vmem:[%s4093_s14 + $0x20] sm:$0xff]   ;;  %v3775_v12 = vld [vmem:[%s4093_s14 + $0x28] sm:$0xff]  }
 0xa89   :  { %1253 = vadd.xlane.f32.xlu0 %v1252_v15 }
 0xa8a   :  { %v1255_v16 = vsel %vm147_vm1, %v4461_v14, 0.0 }
 0xa8b   :  { %1256 = vadd.xlane.f32.xlu1 %v1255_v16 }
 0xb16   :  { %v1254_v17 = vpop.xlane.xlu0 %1253 }
 0xb17   :  { %v1258_v18 = vmul.f32 0.015625, %v1254_v17 }
 0xb18   :  { %v1257_v5 = vpop.xlane.xlu1 %1256 }
 0xb19   :  { %v1260_v19 = vsub.f32 %v4458_v11, %v1258_v18  ;;  %v1259_v7 = vmul.f32 0.015625, %v1257_v5  ;;  %v3776_v18 = vld [vmem:[%s4093_s14 + $0x30] sm:$0xff]  }
 0xb1b   :  { %v1261_v20 = vsub.f32 %v4461_v14, %v1259_v7  ;;  %v1262_v21 = vmul.f32 %v1260_v19, %v1260_v19 }
 0xb1d   :  { %v1264_v25 = vsel %vm143_vm0, %v1262_v21, 0.0  ;;  %v1263_v27 = vmul.f32 %v1261_v20, %v1261_v20  ;;  %v4531_v21 = vld [vmem:[%s4098_s19 + $0x1] ss:$0 sm:$0xff] }
 0xb1e   :  { %1265 = vadd.xlane.f32.xlu0 %v1264_v25 }
 0xb1f   :  { %v1267_v28 = vsel %vm147_vm1, %v1263_v27, 0.0  ;;  %v3118_v27 = vld [vmem:[%s4103_s24 + $0x1] ss:$0 sm:$0xff] }
 0xb20   :  { %1268 = vadd.xlane.f32.xlu1 %v1267_v28 }
 0xbab   :  { %v1266_v43 = vpop.xlane.xlu0 %1265 }
 0xbac   :  { %v1270_v45 = vmul.f32 0.015625, %v1266_v43 }
 0xbad   :  { %v1269_v48 = vpop.xlane.xlu1 %1268 }
 0xbae   :  { %v1272_v24 = vadd.f32 1e-05, %v1270_v45  ;;  %v1271_v49 = vmul.f32 0.015625, %v1269_v48 }
 0xbb0   :  { %3906 = vrsqrt.f32 %v1272_v24  ;;  %v1273_v46 = vadd.f32 1e-05, %v1271_v49 }
 0xbb2   :  { %3908 = vrsqrt.f32 %v1273_v46 }
 0xbba   :  { %v3907_v50 = vpop.eup %3906 }
 0xbbb   :  { %v1276_v51 = vmul.f32 %v3907_v50, %v1260_v19  ;;  %v3777_v19 = vld [vmem:[%s4093_s14 + $0x38] sm:$0xff]   ;;  %s4038_s14 = smov [#allocation4]  }
 0xbbc   :  { %v3909_v54 = vpop.eup %3908  ;;  %s2975_s19 = sshll.u32 %s4038_s14, 4  ;;  %s2976_s19 = int_to_ptr.vmem [resolvable:$true] %s2975_s19 }
 0xbbd   :  { %v1284_v57 = vmul.f32 %v3090_v23, %v1276_v51  ;;  %v1277_v58 = vmul.f32 %v3909_v54, %v1261_v20  ;;  %s3957_s24 = scalar_lea.vmem %s2976_s19, 128  ;;  %p3962_p1 = scmp.lt.s32.totalorder %s2976_s19, %s2976_s19 }
 0xbbe   :  { %p3958_p0 = scmp.ne.s32.totalorder %s2976_s19, %s3957_s24  ;;  %p3963_p2 = scmp.lt.s32.totalorder %s3957_s24, %s3957_s24 }
 0xbbf   :  { %v1292_v22 = vadd.f32 %v3091_v47, %v1284_v57  ;;  %v1285_v59 = vmul.f32 %v3090_v23, %v1277_v58 }
 0xbc0   :  { %p3964_p3 = por %p3963_p2, %p3962_p1 }
 0xbc1   :  { %v1293_v60 = vadd.f32 %v3091_v47, %v1285_v59  ;;  %v1296_v61 = vrot.slane %v1292_v22, 6  ;;  %v1301_v4 = vrot.slane %v1292_v22, 4  ;;  %v1306_v9 = vrot.slane %v1292_v22, 2 }
 0xbc2   :  { %p3965_p4 = pnand %p3964_p3, %p3958_p0 }
 0xbc3   :  { %v1311_v62 = vsel %vm234_vm3, %v1293_v60, %v1296_v61  ;;  %v1297_v63 = vrot.slane %v1293_v60, 6  ;;  %v1302_v1 = vrot.slane %v1293_v60, 4  ;;  %v1307_v5 = vrot.slane %v1293_v60, 2 }
 0xbc4   :  { %v1314_v3 = vpack.c.bf16 %v1311_v62, %v1292_v22 }
 0xbc5   :  { %v1298_v6 = vsel %vm234_vm3, %v1296_v61, %v1297_v63  ;;  %v1303_v8 = vsel %vm240_vm4, %v1301_v4, %v1302_v1  ;;  %v1308_v7 = vsel %vm246_vm5, %v1306_v9, %v1307_v5  ;;  %v3135_v5 = vld [vmem:[%s4108_s30 + $0x1] ss:$0 sm:$0xff] }
 0xbc6   :  { %3576 = vmatmul.mubr.msk.bf16.vlgmr.msra.gmra.mrb[32].mxu1 %vm143_vm0, %v1314_v3  ;;  %3596 = vmatmul.mubr.msk.bf16.vlgmr.msra.gmra.mrb[40].mxu0 %vm143_vm0, %v1314_v3  ;;  %v1312_v15 = vsel %vm240_vm4, %v1298_v6, %v1301_v4  ;;  %v1313_v16 = vsel %vm246_vm5, %v1303_v8, %v1306_v9  ;;  %v1316_v20 = vpack.c.bf16 %v1308_v7, %v1308_v7 }
 0xbc7   :  { %3579 = vmatprep.mubr.msk.bf16.mxu1 %vm4035_vm2, %v4034_v44  ;;  %3599 = vmatprep.mubr.msk.bf16.mxu0 %vm4035_vm2, %v4034_v44  ;;  %v1315_v17 = vpack.c.bf16 %v1313_v16, %v1312_v15 }
 0xbc8   :  { %3608 = vmatpush3.bf16.msra.mxu1 %v3774_v32 }
 0xbc9   :  { %3609 = vmatprep.subr.bf16.mxu1 %v4034_v44 }
 0xbcc   :  { %3610 = vmatpush3.bf16.msra.mxu1 %v3775_v12 }
 0xbcd   :  { %3611 = vmatprep.subr.bf16.mxu1 %v4034_v44 }
 0xbce   :  { %3580 = vmatmul.mubr.msk.bf16.gmra.mrb[36].mxu1 %vm143_vm0, %v1315_v17  ;;  %3600 = vmatmul.mubr.msk.bf16.gmra.mrb[44].mxu0 %vm143_vm0, %v1315_v17 }
 0xbcf   :  { %3583 = vmatprep.mubr.msk.bf16.mxu1 %vm4035_vm2, %v4034_v44  ;;  %3603 = vmatprep.mubr.msk.bf16.mxu0 %vm4035_vm2, %v4034_v44 }
 0xbd0   :  { %3612 = vmatpush3.bf16.msra.mxu1 %v3776_v18 }
 0xbd1   :  { %3613 = vmatprep.subr.bf16.mxu1 %v4034_v44 }
 0xbd4   :  { %3614 = vmatpush3.bf16.msra.mxu1 %v3777_v19 }
 0xbd5   :  { %3645 = vmatprep.subr.bf16.mxu1 %v4034_v44 }
 0xbd6   :  { %3584 = vmatmul.mubr.msk.bf16.gmra.mrb[40].mxu1 %vm143_vm0, %v1316_v20  ;;  %3604 = vmatmul.mubr.msk.bf16.gmra.mrb[48].mxu0 %vm143_vm0, %v1316_v20 }
 0xbd7   :  { %3615 = vmatprep.mubr.msk.bf16.mxu1 %vm4035_vm2, %v4034_v44  ;;  %3633 = vmatprep.mubr.msk.bf16.mxu0 %vm4035_vm2, %v4034_v44 }
 0xbde   :  { %3616 = vmatmul.mubr.msk.bf16.vlgmr.msra.gmra.mrb[44].mxu1 %vm143_vm0, %v1314_v3 }
 0xbdf   :  { %3619 = vmatprep.mubr.msk.bf16.mxu1 %vm4035_vm2, %v4034_v44 }
 0xbe6   :  { %3620 = vmatmul.mubr.msk.bf16.gmra.mrb[48].mxu1 %vm143_vm0, %v1315_v17 }
 0xbe7   :  { %3623 = vmatprep.mubr.msk.bf16.mxu1 %vm4035_vm2, %v4034_v44 }
 0xbee   :  { %3624 = vmatmul.mubr.msk.bf16.gmra.mrb[52].mxu1 %vm143_vm0, %v1316_v20 }
 0xbef   :  { %3651 = vmatprep.mubr.msk.bf16.mxu1 %vm4035_vm2, %v4034_v44 }
 0xc99   :  { %v1401_v25 = vpop.f32.mrb[32].mxu1  ;;  %v1498_v28 = vpop.f32.mrb[40].mxu0 }
 0xc9a   :  { %v1402_v31 = vadd.f32 %v4531_v21, %v1401_v25  ;;  %v3577_v33 = vpop.f32.mrb[33].mxu1  ;;  %v3597_v36 = vpop.f32.mrb[41].mxu0  ;;  %v1499_v40 = vadd.f32 %v3118_v27, %v1498_v28 }
 0xc9b   :  { %v1404_v37 = vpop.f32.mrb[34].mxu1  ;;  %v1501_v39 = vpop.f32.mrb[42].mxu0 }
 0xc9c   :  { %v1405_v41 = vadd.f32 %v4531_v21, %v1404_v37  ;;  %v1502_v42 = vadd.f32 %v3118_v27, %v1501_v39  ;;  %v3578_v43 = vpop.f32.mrb[35].mxu1  ;;  %v3598_v45 = vpop.f32.mrb[43].mxu0  ;;  %v1617_v48 = vmul.f32 %v1402_v31, %v4291_v29 }
 0xc9e   :  { %v1618_v24 = vmul.f32 %v1405_v41, %v4295_v34  ;;  %v1625_v49 = vpack.c.bf16 %v1502_v42, %v1499_v40 }
 0xca0   :  { %v1622_v46 = vpack.c.bf16 %v1618_v24, %v1617_v48  ;;  %v1641_v50 = vsel %vm143_vm0, %v1625_v49, 0 }
 0xca1   :  { %v1409_v23 = vpop.f32.mrb[36].mxu1  ;;  %v1506_v51 = vpop.f32.mrb[44].mxu0  ;;  %3628 = vmatpush3.bf16.xpose.msra.mxu0 %v1641_v50 }
 0xca2   :  { %v1410_v54 = vadd.f32 %v4531_v21, %v1409_v23  ;;  %v3581_v47 = vpop.f32.mrb[37].mxu1  ;;  %v3601_v57 = vpop.f32.mrb[45].mxu0  ;;  %3629 = vmatprep.subr.bf16.mxu0 %v4034_v44  ;;  %v1507_v59 = vadd.f32 %v3118_v27, %v1506_v51 }
 0xca3   :  { %v1412_v58 = vpop.f32.mrb[38].mxu1  ;;  %v1509_v22 = vpop.f32.mrb[46].mxu0 }
 0xca4   :  { %v1413_v29 = vadd.f32 %v4531_v21, %v1412_v58  ;;  %v1510_v60 = vadd.f32 %v3118_v27, %v1509_v22  ;;  %v3582_v34 = vpop.f32.mrb[39].mxu1  ;;  %v3602_v61 = vpop.f32.mrb[47].mxu0  ;;  %v1619_v62 = vmul.f32 %v1410_v54, %v4308_v52 }
 0xca6   :  { %v1620_v63 = vmul.f32 %v1413_v29, %v4312_v56  ;;  %v1626_v1 = vpack.c.bf16 %v1510_v60, %v1507_v59 }
 0xca8   :  { %v1623_v3 = vpack.c.bf16 %v1620_v63, %v1619_v62  ;;  %v1644_v4 = vsel %vm143_vm0, %v1626_v1, 0 }
 0xca9   :  { %v1417_v32 = vpop.f32.mrb[40].mxu1  ;;  %v1514_v6 = vpop.f32.mrb[48].mxu0  ;;  %3630 = vmatpush3.bf16.xpose.msra.mxu0 %v1644_v4 }
 0xcaa   :  { %v1515_v8 = vadd.f32 %v3118_v27, %v1514_v6  ;;  %v3585_v9 = vpop.f32.mrb[41].mxu1  ;;  %v3605_v12 = vpop.f32.mrb[49].mxu0  ;;  %3631 = vmatprep.subr.bf16.mxu0 %v4034_v44  ;;  %v1418_v42 = vadd.f32 %v4531_v21, %v1417_v32 }
 0xcab   :  { %v1420_v15 = vpop.f32.mrb[42].mxu1  ;;  %v1517_v16 = vpop.f32.mrb[50].mxu0 }
 0xcac   :  { %v1627_v17 = vpack.c.bf16 %v1515_v8, %v1515_v8  ;;  %v3586_v18 = vpop.f32.mrb[43].mxu1  ;;  %v3606_v52 = vpop.f32.mrb[51].mxu0  ;;  %v1621_v48 = vmul.f32 %v1418_v42, %v4331_v38 }
 0xcae   :  { %v1647_v56 = vsel %vm143_vm0, %v1627_v17, 0  ;;  %v1624_v51 = vpack.c.bf16 %v1621_v48, %v1621_v48 }
 0xcb1   :  { %v1595_v19 = vpop.f32.mrb[44].mxu1  ;;  %3632 = vmatpush3.bf16.xpose.msra.mxu0 %v1647_v56 }
 0xcb2   :  { %v3617_v7 = vpop.f32.mrb[45].mxu1  ;;  %3663 = vmatprep.subr.bf16.mxu0 %v4034_v44  ;;  %v1596_v25 = vadd.f32 %v3135_v5, %v1595_v19 }
 0xcb3   :  { %v1598_v20 = vpop.f32.mrb[46].mxu1 }
 0xcb4   :  { %v1599_v27 = vadd.f32 %v3135_v5, %v1598_v20  ;;  %v3618_v28 = vpop.f32.mrb[47].mxu1 }
 0xcb6   :  { %v1628_v31 = vpack.c.bf16 %v1599_v27, %v1596_v25 }
 0xcb8   :  { %3634 = vmatmul.mubr.msk.bf16.vlgmr.msra.gmra.mrb[52].mxu0 %vm143_vm0, %v1622_v46  ;;  %3646 = vmatpush3.bf16.msra.mxu1 %v1628_v31 }
 0xcb9   :  { %v1603_v33 = vpop.f32.mrb[48].mxu1  ;;  %3637 = vmatprep.mubr.msk.bf16.mxu0 %vm4035_vm2, %v4034_v44  ;;  %3647 = vmatprep.subr.bf16.mxu1 %v4034_v44 }
 0xcba   :  { %v3621_v36 = vpop.f32.mrb[49].mxu1  ;;  %v1604_v39 = vadd.f32 %v3135_v5, %v1603_v33 }
 0xcbb   :  { %v1606_v37 = vpop.f32.mrb[50].mxu1 }
 0xcbc   :  { %v1607_v40 = vadd.f32 %v3135_v5, %v1606_v37  ;;  %v3622_v41 = vpop.f32.mrb[51].mxu1 }
 0xcbe   :  { %v1629_v43 = vpack.c.bf16 %v1607_v40, %v1604_v39 }
 0xcc0   :  { %3638 = vmatmul.mubr.msk.bf16.gmra.mrb[56].mxu0 %vm143_vm0, %v1623_v3  ;;  %3648 = vmatpush3.bf16.msra.mxu1 %v1629_v43 }
 0xcc1   :  { %v1611_v45 = vpop.f32.mrb[52].mxu1  ;;  %3649 = vmatprep.subr.bf16.mxu1 %v4034_v44  ;;  %3641 = vmatprep.mubr.msk.bf16.mxu0 %vm4035_vm2, %v4034_v44 }
 0xcc2   :  { %v1612_v24 = vadd.f32 %v3135_v5, %v1611_v45  ;;  %v3625_v49 = vpop.f32.mrb[53].mxu1 }
 0xcc3   :  { %v1614_v46 = vpop.f32.mrb[54].mxu1 }
 0xcc4   :  { %v1630_v50 = vpack.c.bf16 %v1612_v24, %v1612_v24  ;;  %v3626_v23 = vpop.f32.mrb[55].mxu1 }
 0xcc6   :  { %v1773_v21 = vsel %vm240_vm4, %v1630_v50, 0 }
 0xcc7   :  { %3650 = vmatpush3.bf16.msra.mxu1 %v1773_v21 }
 0xcc8   :  { %3642 = vmatmul.mubr.msk.bf16.gmra.mrb[60].mxu0 %vm143_vm0, %v1624_v51 }
 0xcc9   :  { %3671 = vmatprep.mubr.msk.bf16.mxu0 %vm4035_vm2, %v4034_v44 }
 0xd8b   :  { %v1683_v54 = vpop.f32.mrb[52].mxu0 }
 0xd8c   :  { %v1684_v47 = vadd.f32 %v1683_v54, %v4344_v53  ;;  %v3635_v57 = vpop.f32.mrb[53].mxu0 }
 0xd8d   :  { %v1686_v58 = vpop.f32.mrb[54].mxu0 }
 0xd8e   :  { %v1687_v38 = vadd.f32 %v1686_v58, %v4347_v55  ;;  %v3636_v22 = vpop.f32.mrb[55].mxu0  ;;  %v1705_v59 = vsel %vm640_vm6, %v1684_v47, -inf }
 0xd8f   :  { %1706 = vmax.xlane.f32.xlu0 %v1705_v59 }
 0xd90   :  { %v1708_v29 = vsel %vm640_vm6, %v1687_v38, -inf }
 0xd91   :  { %1709 = vmax.xlane.f32.xlu1 %v1708_v29 }
 0xd93   :  { %v1691_v60 = vpop.f32.mrb[56].mxu0 }
 0xd94   :  { %v1692_v34 = vadd.f32 %v1691_v60, %v4354_v0  ;;  %v3639_v61 = vpop.f32.mrb[57].mxu0  ;;  %v3778_v60 = vld [vmem:[%s4113_s6 + $0x20] sm:$0xff]  }
 0xd95   :  { %v1694_v62 = vpop.f32.mrb[58].mxu0  ;;  %3664 = vmatpush3.bf16.msra.mxu0 %v3778_v60  ;;  %v3780_v61 = vld [vmem:[%s4113_s6 + $0x30] sm:$0xff]  }
 0xd96   :  { %v1695_v63 = vadd.f32 %v1694_v62, %v4357_v2  ;;  %v3640_v1 = vpop.f32.mrb[59].mxu0  ;;  %v1711_v53 = vsel %vm640_vm6, %v1692_v34, -inf  ;;  %3665 = vmatprep.subr.bf16.mxu0 %v4034_v44  ;;  %v3781_v62 = vld [vmem:[%s4113_s6 + $0x38] sm:$0xff]  }
 0xd97   :  { %1712 = vmax.xlane.f32.xlu0 %v1711_v53 }
 0xd98   :  { %v1714_v55 = vsel %vm640_vm6, %v1695_v63, -inf }
 0xd99   :  { %1715 = vmax.xlane.f32.xlu1 %v1714_v55 }
 0xd9b   :  { %v1699_v3 = vpop.f32.mrb[60].mxu0 }
 0xd9c   :  { %v1700_v4 = vadd.f32 %v1699_v3, %v4364_v10  ;;  %v3643_v32 = vpop.f32.mrb[61].mxu0  ;;  %v3952_v3 = vld [vmem:[%s4058_s13 + $0x8] sm:$0xff] }
 0xd9d   :  { %v1702_v6 = vpop.f32.mrb[62].mxu0 }
 0xd9e   :  { %v3644_v8 = vpop.f32.mrb[63].mxu0  ;;  %v1717_v9 = vsel %vm640_vm6, %v1700_v4, -inf  ;;  %v3953_v6 = vld [vmem:[%s4058_s13 + $0x10] sm:$0xff] }
 0xd9f   :  { %1718 = vmax.xlane.f32.xlu0 %v1717_v9 }
 0xe1c   :  { %v1707_v0 = vpop.xlane.xlu0 %1706 }
 0xe1d   :  { %v1720_v12 = vsub.f32 %v1684_v47, %v1707_v0 }
 0xe1e   :  { %v1710_v15 = vpop.xlane.xlu1 %1709 }
 0xe1f   :  { %v1725_v2 = vmul.f32 1.442695, %v1720_v12  ;;  %v1721_v16 = vsub.f32 %v1687_v38, %v1710_v15 }
 0xe21   :  { %3910 = vpow2.f32 %v1725_v2  ;;  %v1727_v17 = vmul.f32 1.442695, %v1721_v16  ;;  %v3954_v2 = vld [vmem:[%s4058_s13 + $0x18] sm:$0xff] }
 0xe23   :  { %3912 = vpow2.f32 %v1727_v17 }
 0xe24   :  { %v1713_v18 = vpop.xlane.xlu0 %1712 }
 0xe25   :  { %v1722_v52 = vsub.f32 %v1692_v34, %v1713_v18  ;;  %v3779_v34 = vld [vmem:[%s4113_s6 + $0x28] sm:$0xff]   ;;  %v3955_v18 = vld [vmem:[%s4058_s13] sm:$0xff] }
 0xe26   :  { %v1716_v56 = vpop.xlane.xlu1 %1715  ;;  %3666 = vmatpush3.bf16.msra.mxu0 %v3779_v34 }
 0xe27   :  { %v1729_v5 = vmul.f32 1.442695, %v1722_v52  ;;  %v1723_v19 = vsub.f32 %v1695_v63, %v1716_v56  ;;  %3667 = vmatprep.subr.bf16.mxu0 %v4034_v44 }
 0xe29   :  { %3914 = vpow2.f32 %v1729_v5  ;;  %v1731_v10 = vmul.f32 1.442695, %v1723_v19 }
 0xe2a   :  { %3668 = vmatpush3.bf16.msra.mxu0 %v3780_v61 }
 0xe2b   :  { %v3911_v7 = vpop.eup %3910  ;;  %3916 = vpow2.f32 %v1731_v10  ;;  %3669 = vmatprep.subr.bf16.mxu0 %v4034_v44 }
 0xe2c   :  { %v1719_v20 = vpop.xlane.xlu0 %1718  ;;  %v1735_v25 = vsel %vm640_vm6, %v3911_v7, 0.0 }
 0xe2d   :  { %v3913_v27 = vpop.eup %3912  ;;  %v1724_v28 = vsub.f32 %v1700_v4, %v1719_v20  ;;  %1736 = vadd.xlane.f32.xlu1 %v1735_v25 }
 0xe2e   :  { %v1738_v31 = vsel %vm640_vm6, %v3913_v27, 0.0  ;;  %3670 = vmatpush3.bf16.msra.mxu0 %v3781_v62 }
 0xe2f   :  { %v1733_v33 = vmul.f32 1.442695, %v1724_v28  ;;  %1739 = vadd.xlane.f32.xlu0 %v1738_v31  ;;  %v3956_v31 = vld [vmem:[%s4058_s13 + $0x20] sm:$0xff]  ;;  %s4746_s13 = sld [smem:[#allocation17_spill]] }
 0xe31   :  { %3918 = vpow2.f32 %v1733_v33 }
 0xe33   :  { %v3915_v36 = vpop.eup %3914 }
 0xe34   :  { %v1741_v37 = vsel %vm640_vm6, %v3915_v36, 0.0 }
 0xe35   :  { %v3917_v39 = vpop.eup %3916  ;;  %1742 = vadd.xlane.f32.xlu1 %v1741_v37 }
 0xe36   :  { %v1744_v40 = vsel %vm640_vm6, %v3917_v39, 0.0 }
 0xe37   :  { %1745 = vadd.xlane.f32.xlu0 %v1744_v40 }
 0xe3b   :  { %v3919_v41 = vpop.eup %3918 }
 0xe3c   :  { %v1747_v42 = vsel %vm640_vm6, %v3919_v41, 0.0 }
 0xe3d   :  { %1748 = vadd.xlane.f32.xlu1 %v1747_v42 }
 0xeba   :  { %v1737_v43 = vpop.xlane.xlu1 %1736 }
 0xebb   :  { %3920 = vrcp.f32 %v1737_v43 }
 0xebc   :  { %v1740_v45 = vpop.xlane.xlu0 %1739 }
 0xebd   :  { %3922 = vrcp.f32 %v1740_v45 }
 0xec2   :  { %v1743_v48 = vpop.xlane.xlu1 %1742 }
 0xec3   :  { %3924 = vrcp.f32 %v1743_v48 }
 0xec4   :  { %v1746_v24 = vpop.xlane.xlu0 %1745 }
 0xec5   :  { %v3921_v49 = vpop.eup %3920  ;;  %3926 = vrcp.f32 %v1746_v24  ;;  %v3158_v24 = vld [vmem:[%s4739_s0 + $0x1] ss:$0 sm:$0xff] }
 0xec6   :  { %v1755_v50 = vmul.f32 %v3921_v49, %v3911_v7 }
 0xec7   :  { %v3923_v46 = vpop.eup %3922 }
 0xec8   :  { %v1756_v23 = vmul.f32 %v3923_v46, %v3913_v27 }
 0xeca   :  { %v1760_v51 = vpack.c.bf16 %v1756_v23, %v1755_v50  ;;  %v1749_v21 = vpop.xlane.xlu1 %1748 }
 0xecb   :  { %3928 = vrcp.f32 %v1749_v21 }
 0xecc   :  { %3652 = vmatmul.mubr.msk.bf16.vlgmr.msra.gmra.mrb[56].mxu1 %vm640_vm6, %v1760_v51 }
 0xecd   :  { %v3925_v54 = vpop.eup %3924  ;;  %3655 = vmatprep.mubr.msk.bf16.mxu1 %vm4035_vm2, %v4034_v44 }
 0xece   :  { %v1757_v57 = vmul.f32 %v3925_v54, %v3915_v36 }
 0xecf   :  { %v3927_v47 = vpop.eup %3926 }
 0xed0   :  { %v1758_v58 = vmul.f32 %v3927_v47, %v3917_v39 }
 0xed2   :  { %v1761_v38 = vpack.c.bf16 %v1758_v58, %v1757_v57 }
 0xed4   :  { %3656 = vmatmul.mubr.msk.bf16.gmra.mrb[60].mxu1 %vm640_vm6, %v1761_v38 }
 0xed5   :  { %v3929_v22 = vpop.eup %3928  ;;  %3659 = vmatprep.mubr.msk.bf16.mxu1 %vm4035_vm2, %v4034_v44 }
 0xed6   :  { %v1759_v59 = vmul.f32 %v3929_v22, %v3919_v41 }
 0xed8   :  { %v1762_v29 = vpack.c.bf16 %v1759_v59, %v1759_v59 }
 0xedc   :  { %3660 = vmatmul.mubr.msk.bf16.gmra.mrb[64].mxu1 %vm640_vm6, %v1762_v29 }
 0xedd   :  { %2093 = vmatprep.mubr.bf16.mxu1 %v4036_v35 }
 0xf9f   :  { %v1809_v63 = vpop.f32.mrb[56].mxu1 }
 0xfa0   :  { %v3653_v1 = vpop.f32.mrb[57].mxu1  ;;  %v1831_v52 = vmul.f32 %v3955_v18, %v1809_v63  ;;  %v3784_v63 = vld [vmem:[%s4740_s5 + $0x44] ss:$8 sps:$4 sm:$0xff]  }
 0xfa1   :  { %v1812_v53 = vpop.f32.mrb[58].mxu1  ;;  %v3782_v1 = vld [vmem:[%s4740_s5 + $0x40] ss:$8 sps:$4 sm:$0xff]   ;;  %2061 = vmatprep.subr.bf16.mxu1 %v3784_v63 }
 0xfa2   :  { %v3654_v55 = vpop.f32.mrb[59].mxu1  ;;  %v1832_v4 = vmul.f32 %v3952_v3, %v1812_v53  ;;  %2062 = vmatpush1.bf16.msra.mxu1 %v3782_v1  ;;  %v3787_v53 = vld [vmem:[%s4740_s5 + $0x54] ss:$8 sps:$4 sm:$0xff]   ;;  %v3790_v3 = vld [vmem:[%s4740_s5 + $0x64] ss:$8 sps:$4 sm:$0xff]  }
 0xfa3   :  { %v3785_v55 = vld [vmem:[%s4740_s5 + $0x50] ss:$8 sps:$4 sm:$0xff]   ;;  %2063 = vmatprep.subr.bf16.mxu1 %v3787_v53 }
 0xfa4   :  { %v1838_v12 = vrot.slane %v1832_v4, 2 }
 0xfa6   :  { %2064 = vmatpush1.bf16.msra.mxu1 %v3785_v55 }
 0xfa7   :  { %v1817_v32 = vpop.f32.mrb[60].mxu1  ;;  %2065 = vmatprep.subr.bf16.mxu1 %v3790_v3 }
 0xfa8   :  { %v1833_v8 = vmul.f32 %v3953_v6, %v1817_v32  ;;  %v3657_v9 = vpop.f32.mrb[61].mxu1  ;;  %v3793_v32 = vld [vmem:[%s4740_s5 + $0x74] ss:$8 sps:$4 sm:$0xff]   ;;  %v3791_v6 = vld [vmem:[%s4740_s5 + $0x70] ss:$8 sps:$4 sm:$0xff]  }
 0xfa9   :  { %v1820_v0 = vpop.f32.mrb[62].mxu1 }
 0xfaa   :  { %v1839_v15 = vrot.slane %v1833_v8, 2  ;;  %v1834_v16 = vmul.f32 %v3954_v2, %v1820_v0  ;;  %v3658_v17 = vpop.f32.mrb[63].mxu1  ;;  %v1846_v19 = vrot.slane %v1833_v8, 4 }
 0xfab   :  { %v3166_v17 = vld [vmem:[%s4741_s9 + $0x1] ss:$0 sm:$0xff] }
 0xfac   :  { %v1840_v56 = vsel %vm246_vm5, %v1838_v12, %v1839_v15  ;;  %v1844_v5 = vadd.f32 %v1839_v15, %v1832_v4  ;;  %v1847_v10 = vrot.slane %v1834_v16, 4  ;;  %v1854_v39 = vrot.slane %v1834_v16, 6  ;;  %v3788_v4 = vld [vmem:[%s4740_s5 + $0x60] ss:$8 sps:$4 sm:$0xff]  }
 0xfad   :  { %v1843_v7 = vadd.f32 %v1840_v56, %v1831_v52  ;;  %2066 = vmatpush1.bf16.msra.mxu1 %v3788_v4 }
 0xfae   :  { %v1848_v20 = vsel %vm240_vm4, %v1846_v19, %v1847_v10  ;;  %v1852_v25 = vadd.f32 %v1847_v10, %v1844_v5  ;;  %2067 = vmatprep.subr.bf16.mxu1 %v3793_v32  ;;  %v3167_v19 = vld [vmem:[%s4742_s17 + $0x1] ss:$0 sm:$0xff] }
 0xfaf   :  { %v1851_v27 = vadd.f32 %v1848_v20, %v1843_v7  ;;  %v1825_v28 = vpop.f32.mrb[64].mxu1 }
 0xfb0   :  { %v1835_v33 = vmul.f32 %v3956_v31, %v1825_v28  ;;  %v3661_v36 = vpop.f32.mrb[65].mxu1  ;;  %v3795_v28 = vld [vmem:[%s4743_s21 + $0x80] sm:$0xff]   ;;  %v3796_v31 = vld [vmem:[%s4743_s21 + $0xc8] sm:$0xff]  }
 0xfb1   :  { %v1828_v37 = vpop.f32.mrb[66].mxu1  ;;  %2068 = vmatpush1.bf16.msra.mxu1 %v3791_v6  ;;  %v3798_v36 = vld [vmem:[%s4743_s21 + $0xd0] sm:$0xff]  }
 0xfb2   :  { %v1855_v40 = vrot.slane %v1835_v33, 6  ;;  %v3662_v41 = vpop.f32.mrb[67].mxu1  ;;  %3675 = vmatprep.subr.bf16.mxu1 %v4034_v44  ;;  %v3797_v33 = vld [vmem:[%s4743_s21 + $0x88] sm:$0xff]   ;;  %v3799_v37 = vld [vmem:[%s4743_s21 + $0x90] sm:$0xff]  }
 0xfb3   :  { %v3802_v41 = vld [vmem:[%s4743_s21 + $0xe0] sm:$0xff]  }
 0xfb4   :  { %v1856_v42 = vsel %vm234_vm3, %v1854_v39, %v1855_v40  ;;  %v1860_v43 = vadd.f32 %v1855_v40, %v1852_v25  ;;  %v3800_v39 = vld [vmem:[%s4743_s21 + $0xd8] sm:$0xff]  }
 0xfb5   :  { %v1859_v45 = vadd.f32 %v1856_v42, %v1851_v27  ;;  %v3794_v27 = vld [vmem:[%s4743_s21 + $0xc0] sm:$0xff]   ;;  %v3801_v40 = vld [vmem:[%s4743_s21 + $0x98] sm:$0xff]  }
 0xfb6   :  { %3388 = vmatprep.subr.bf16.mxu0 %v3794_v27  ;;  %v3803_v42 = vld [vmem:[%s4743_s21 + $0xa0] sm:$0xff]  }
 0xfb7   :  { %v1861_v48 = vpack.c.bf16 %v1860_v43, %v1859_v45  ;;  %v3804_v43 = vld [vmem:[%s4743_s21 + $0xe8] sm:$0xff]  }
 0xfb8   :  { %v3805_v45 = vld [vmem:[%s4743_s21 + $0xa8] sm:$0xff]  }
 0xfb9   :  { %3672 = vmatmul.mubr.msk.bf16.vlgmr.msra.gmra.mrb[64].mxu0 %vm143_vm0, %v1861_v48  ;;  %v3806_v48 = vld [vmem:[%s4743_s21 + $0xf0] sm:$0xff]  }
 0xfba   :  { %3389 = vmatpush3.bf16.msra.mxu0 %v3795_v28 }
 0xfbb   :  { %3390 = vmatprep.subr.bf16.mxu0 %v3796_v31 }
 0xfbe   :  { %3391 = vmatpush3.bf16.msra.mxu0 %v3797_v33 }
 0xfbf   :  { %3392 = vmatprep.subr.bf16.mxu0 %v3798_v36 }
 0xfc2   :  { %3393 = vmatpush3.bf16.msra.mxu0 %v3799_v37 }
 0xfc3   :  { %3394 = vmatprep.subr.bf16.mxu0 %v3800_v39 }
 0xfc6   :  { %3395 = vmatpush3.bf16.msra.mxu0 %v3801_v40 }
 0xfc7   :  { %3396 = vmatprep.subr.bf16.mxu0 %v3802_v41 }
 0xfca   :  { %3397 = vmatpush3.bf16.msra.mxu0 %v3803_v42 }
 0xfcb   :  { %3398 = vmatprep.subr.bf16.mxu0 %v3804_v43 }
 0xfce   :  { %3399 = vmatpush3.bf16.msra.mxu0 %v3805_v45  ;;  %v3811_v45 = vld [vmem:[%s4746_s13 + $0x8] sm:$0xff]  }
 0xfcf   :  { %3400 = vmatprep.subr.bf16.mxu0 %v3806_v48  ;;  %v3812_v48 = vld [vmem:[%s4746_s13 + $0x10] sm:$0xff]  }
0x108c   :  { %v1940_v49 = vpop.f32.mrb[64].mxu0 }
0x108d   :  { %v1941_v46 = vadd.f32 %v3158_v24, %v1940_v49  ;;  %v3673_v50 = vpop.f32.mrb[65].mxu0  ;;  %v3808_v49 = vld [vmem:[%s4743_s21 + $0xf8] sm:$0xff]  }
0x108e   :  { %v1943_v23 = vpop.f32.mrb[66].mxu0  ;;  %v3176_v50 = vld [vmem:[%s4744_s7 + $0x2] sm:$0x3] }
0x108f   :  { %v4604_v51 = vadd.f32 %v1941_v46, %v4458_v11  ;;  %v1944_v21 = vadd.f32 %v3158_v24, %v1943_v23  ;;  %v3674_v54 = vpop.f32.mrb[67].mxu0  ;;  %v3807_v24 = vld [vmem:[%s4743_s21 + $0xb0] sm:$0xff]   ;;  %v3809_v46 = vld [vmem:[%s4743_s21 + $0xb8] sm:$0xff]   ;;  %v2011_v23 = vrot.slane %v3176_v50, %v4446_v13 }
0x1090   :  { %3401 = vmatpush3.bf16.msra.mxu0 %v3807_v24  ;;  %v3813_v24 = vld [vmem:[%s4746_s13 + $0x18] sm:$0xff]  }
0x1091   :  { %v1953_v47 = vsel %vm143_vm0, %v4604_v51, 0.0  ;;  %v1948_v57 = vadd.f32 %v1944_v21, %v4461_v14  ;;  %3402 = vmatprep.subr.bf16.mxu0 %v3808_v49  ;;  %v2015_v21 = vrot.slane %v3176_v50, %v4450_v30  ;;  %v3816_v49 = vld [vmem:[%s4747_s25 + $0x4] ss:$16 sps:$4 sm:$0xff]   ;;  %v3819_v50 = vld [vmem:[%s4747_s25 + $0xc] ss:$16 sps:$4 sm:$0xff]  }
0x1092   :  { %1954 = vadd.xlane.f32.xlu0 %v1953_v47 }
0x1093   :  { %v1956_v58 = vsel %vm147_vm1, %v1948_v57, 0.0 }
0x1094   :  { %1957 = vadd.xlane.f32.xlu1 %v1956_v58  ;;  %3403 = vmatpush3.bf16.msra.mxu0 %v3809_v46  ;;  %v3817_v46 = vld [vmem:[%s4747_s25 + $0x8] ss:$16 sps:$4 sm:$0xff]  }
0x1095   :  { %2543 = vmatprep.subr.bf16.mxu0 %v3819_v50 }
0x111f   :  { %v1955_v38 = vpop.xlane.xlu0 %1954 }
0x1120   :  { %v1959_v22 = vmul.f32 0.015625, %v1955_v38 }
0x1121   :  { %v1958_v59 = vpop.xlane.xlu1 %1957 }
0x1122   :  { %v1961_v11 = vsub.f32 %v4604_v51, %v1959_v22  ;;  %v1960_v29 = vmul.f32 0.015625, %v1958_v59 }
0x1124   :  { %v1962_v60 = vsub.f32 %v1948_v57, %v1960_v29  ;;  %v1963_v34 = vmul.f32 %v1961_v11, %v1961_v11 }
0x1126   :  { %v1965_v14 = vsel %vm143_vm0, %v1963_v34, 0.0  ;;  %v1964_v61 = vmul.f32 %v1962_v60, %v1962_v60 }
0x1127   :  { %1966 = vadd.xlane.f32.xlu0 %v1965_v14 }
0x1128   :  { %v1968_v62 = vsel %vm147_vm1, %v1964_v61, 0.0 }
0x1129   :  { %1969 = vadd.xlane.f32.xlu1 %v1968_v62 }
0x11b4   :  { %v1967_v8 = vpop.xlane.xlu0 %1966 }
0x11b5   :  { %v1971_v9 = vmul.f32 0.015625, %v1967_v8 }
0x11b6   :  { %v1970_v0 = vpop.xlane.xlu1 %1969 }
0x11b7   :  { %v1973_v12 = vadd.f32 1e-05, %v1971_v9  ;;  %v1972_v15 = vmul.f32 0.015625, %v1970_v0 }
0x11b9   :  { %3930 = vrsqrt.f32 %v1973_v12  ;;  %v1974_v2 = vadd.f32 1e-05, %v1972_v15 }
0x11bb   :  { %3932 = vrsqrt.f32 %v1974_v2 }
0x11c3   :  { %v3931_v16 = vpop.eup %3930 }
0x11c4   :  { %v1977_v18 = vmul.f32 %v3931_v16, %v1961_v11 }
0x11c5   :  { %v3933_v52 = vpop.eup %3932 }
0x11c6   :  { %v1985_v56 = vmul.f32 %v3166_v17, %v1977_v18  ;;  %v1978_v5 = vmul.f32 %v3933_v52, %v1962_v60 }
0x11c8   :  { %v1986_v10 = vmul.f32 %v3166_v17, %v1978_v5  ;;  %v1993_v7 = vadd.f32 %v3167_v19, %v1985_v56 }
0x11ca   :  { %v1994_v20 = vadd.f32 %v3167_v19, %v1986_v10 }
0x11cc   :  { %v1995_v25 = vpack.c.bf16 %v1994_v20, %v1993_v7 }
0x11ce   :  { %3185 = vmatmul.mubr.msk.bf16.vlgmr.msra.gmra.mrb[68].mxu1 %vm143_vm0, %v1995_v25  ;;  %v3239_v25 = vld [vmem:[%s4745_s10 + $0x1] ss:$0 sm:$0xff] }
0x11cf   :  { %3683 = vmatprep.mubr.msk.bf16.mxu1 %vm4035_vm2, %v4034_v44 }
0x12a1   :  { %v2095_v54 = vpop.f32.mrb[68].mxu1 }
0x12a2   :  { %v2096_v47 = vadd.f32 %v2095_v54, %v2011_v23  ;;  %v2097_v57 = vpop.f32.mrb[69].mxu1 }
0x12a3   :  { %v2098_v58 = vadd.f32 %v2097_v57, %v2015_v21  ;;  %v2099_v38 = vpop.f32.mrb[70].mxu1 }
0x12a4   :  { %v3186_v22 = vmul.f32 -1.702, %v2096_v47  ;;  %v2100_v59 = vadd.f32 %v2099_v38, %v2011_v23  ;;  %v2101_v11 = vpop.f32.mrb[71].mxu1  ;;  %v3825_v23 = vld [vmem:[%s4747_s25 + $0x2c] ss:$16 sps:$4 sm:$0xff]  }
0x12a5   :  { %v3187_v29 = vmul.f32 -1.702, %v2098_v58  ;;  %v2102_v60 = vadd.f32 %v2101_v11, %v2015_v21  ;;  %v3823_v21 = vld [vmem:[%s4747_s25 + $0x28] ss:$16 sps:$4 sm:$0xff]  }
0x12a6   :  { %v2112_v34 = vmul.f32 1.442695, %v3186_v22  ;;  %v3188_v14 = vmul.f32 -1.702, %v2100_v59  ;;  %v3241_v22 = vld [vmem:[%s4749_s3] ss:$0 sm:$0xff] }
0x12a7   :  { %v2114_v61 = vmul.f32 1.442695, %v3187_v29  ;;  %v3189_v62 = vmul.f32 -1.702, %v2102_v60  ;;  %v3814_v29 = vld [vmem:[%s4747_s25] ss:$16 sps:$4 sm:$0xff]  }
0x12a8   :  { %3934 = vpow2.f32 %v2112_v34  ;;  %v2116_v63 = vmul.f32 1.442695, %v3188_v14  ;;  %v3822_v34 = vld [vmem:[%s4747_s25 + $0x24] ss:$16 sps:$4 sm:$0xff]   ;;  %v3820_v14 = vld [vmem:[%s4747_s25 + $0x20] ss:$16 sps:$4 sm:$0xff]  }
0x12a9   :  { %3936 = vpow2.f32 %v2114_v61  ;;  %v2118_v1 = vmul.f32 1.442695, %v3189_v62  ;;  %v3826_v61 = vld [vmem:[%s4178_s12 + $0x40] sm:$0xff]  }
0x12aa   :  { %3938 = vpow2.f32 %v2116_v63  ;;  %v3827_v62 = vld [vmem:[%s4178_s12 + $0xc0] sm:$0xff]  }
0x12ab   :  { %3940 = vpow2.f32 %v2118_v1  ;;  %v3828_v1 = vld [vmem:[%s4178_s12] sm:$0xff]  }
0x12b2   :  { %v3935_v53 = vpop.eup %3934 }
0x12b3   :  { %v3937_v55 = vpop.eup %3936  ;;  %v2120_v3 = vadd.f32 1.0, %v3935_v53  ;;  %v3829_v53 = vld [vmem:[%s4178_s12 + $0x80] sm:$0xff]  }
0x12b4   :  { %v3939_v4 = vpop.eup %3938  ;;  %v2121_v32 = vadd.f32 1.0, %v3937_v55 }
0x12b5   :  { %v3941_v6 = vpop.eup %3940  ;;  %3942 = vrcp.f32 %v2120_v3  ;;  %v2122_v8 = vadd.f32 1.0, %v3939_v4  ;;  %v3830_v4 = vld [vmem:[%s4178_s12 + $0x48] sm:$0xff]  }
0x12b6   :  { %3944 = vrcp.f32 %v2121_v32  ;;  %v2123_v9 = vadd.f32 1.0, %v3941_v6  ;;  %v3831_v32 = vld [vmem:[%s4178_s12 + $0xc8] sm:$0xff]  }
0x12b7   :  { %3946 = vrcp.f32 %v2122_v8  ;;  %v3832_v8 = vld [vmem:[%s4178_s12 + $0x8] sm:$0xff]  }
0x12b8   :  { %3948 = vrcp.f32 %v2123_v9  ;;  %v3833_v9 = vld [vmem:[%s4178_s12 + $0x88] sm:$0xff]  }
0x12bf   :  { %v3943_v0 = vpop.eup %3942 }
0x12c0   :  { %v3945_v12 = vpop.eup %3944  ;;  %v2132_v16 = vmul.f32 %v3943_v0, %v2096_v47  ;;  %v3834_v0 = vld [vmem:[%s4178_s12 + $0x50] sm:$0xff]  }
0x12c1   :  { %v3947_v15 = vpop.eup %3946  ;;  %v2133_v18 = vmul.f32 %v3945_v12, %v2098_v58  ;;  %v3240_v58 = vld [vmem:[%s4748_s29] ss:$0 sm:$0xff]  ;;  %v3835_v12 = vld [vmem:[%s4178_s12 + $0xd0] sm:$0xff]  }
0x12c2   :  { %v3949_v2 = vpop.eup %3948  ;;  %v2134_v17 = vmul.f32 %v3947_v15, %v2100_v59  ;;  %v3836_v15 = vld [vmem:[%s4178_s12 + $0x10] sm:$0xff]  }
0x12c3   :  { %v2135_v52 = vmul.f32 %v3949_v2, %v2102_v60  ;;  %v3837_v2 = vld [vmem:[%s4178_s12 + $0x90] sm:$0xff]  }
0x12c4   :  { %v2136_v56 = vpack.c.bf16 %v2134_v17, %v2132_v16  ;;  %v3838_v16 = vld [vmem:[%s4178_s12 + $0x58] sm:$0xff]  }
0x12c5   :  { %v2137_v5 = vpack.c.bf16 %v2135_v52, %v2133_v18  ;;  %v3839_v17 = vld [vmem:[%s4178_s12 + $0xd8] sm:$0xff]  }
0x12c6   :  { %v3840_v18 = vld [vmem:[%s4178_s12 + $0x18] sm:$0xff]  }
0x12c7   :  { %2299 = vmatprep.mubr.bf16.mxu0 %v2137_v5  ;;  %v3841_v52 = vld [vmem:[%s4178_s12 + $0x98] sm:$0xff]   ;;  %v3843_v5 = vld [vmem:[%s4178_s12 + $0xe0] sm:$0xff]  }
0x12c8   :  { %2300 = vmatmul.mubr.bf16.vlgmr.msra.gmra.mrb[68].mxu0 %v2136_v56  ;;  %v3842_v56 = vld [vmem:[%s4178_s12 + $0x60] sm:$0xff]  }
0x12c9   :  { %2575 = vmatprep.mubr.bf16.mxu0 %v4036_v35  ;;  %2544 = vmatpush1.bf16.msra.mxu0 %v3817_v46 }
0x12ca   :  { %2545 = vmatprep.subr.bf16.mxu0 %v3825_v23 }
0x12cd   :  { %2546 = vmatpush1.bf16.msra.mxu0 %v3823_v21 }
0x12ce   :  { %3437 = vmatprep.subr.bf16.mxu0 %v3827_v62 }
0x139b   :  { %v3404_v19 = vpop.f32.mrb[68].mxu0 }
0x139c   :  { %v3405_v10 = vpop.f32.mrb[69].mxu0 }
0x139d   :  { %v3406_v7 = vadd.f32 %v3405_v10, %v3404_v19  ;;  %v3407_v20 = vpop.f32.mrb[70].mxu0  ;;  %v3844_v19 = vld [vmem:[%s4178_s12 + $0x20] sm:$0xff]  }
0x139e   :  { %v3408_v27 = vpop.f32.mrb[71].mxu0  ;;  %v3845_v10 = vld [vmem:[%s4178_s12 + $0xa0] sm:$0xff]   ;;  %v3847_v20 = vld [vmem:[%s4178_s12 + $0xe8] sm:$0xff]  }
0x139f   :  { %v2307_v28 = vadd.f32 %v3406_v7, %v4604_v51  ;;  %v3810_v51 = vld [vmem:[%s4746_s13] sm:$0xff]   ;;  %v3846_v7 = vld [vmem:[%s4178_s12 + $0x68] sm:$0xff]  }
0x13a0   :  { %3676 = vmatpush3.bf16.msra.mxu1 %v3810_v51  ;;  %v3849_v27 = vld [vmem:[%s4178_s12 + $0xa8] sm:$0xff]   ;;  %v2452_v51 = vsub.s32 3, %v4443_v26 }
0x13a1   :  { %v2316_v31 = vadd.f32 %v3239_v25, %v2307_v28  ;;  %3677 = vmatprep.subr.bf16.mxu1 %v4034_v44  ;;  %v3848_v25 = vld [vmem:[%s4178_s12 + $0x28] sm:$0xff]   ;;  %v3850_v28 = vld [vmem:[%s4178_s12 + $0x70] sm:$0xff]  }
0x13a3   :  { %v2318_v33 = vrot.slane %v2316_v31, 4 }
0x13a4   :  { %3678 = vmatpush3.bf16.msra.mxu1 %v3811_v45  ;;  %v4037_v45 = vmov 1983009808  }
0x13a5   :  { %v2321_v36 = vsel %vm2320_vm7, %v2316_v31, %v2318_v33  ;;  %3679 = vmatprep.subr.bf16.mxu1 %v4034_v44  ;;  %v3851_v31 = vld [vmem:[%s4178_s12 + $0xf0] sm:$0xff]  }
0x13a6   :  { %v2324_v37 = vsel %vm147_vm1, %v2321_v36, 0.0  ;;  %v3852_v33 = vld [vmem:[%s4178_s12 + $0x30] sm:$0xff]  }
0x13a7   :  { %2325 = vadd.xlane.f32.xlu0 %v2324_v37  ;;  %v3854_v37 = vld [vmem:[%s4178_s12 + $0x78] sm:$0xff]  }
0x13a8   :  { %3680 = vmatpush3.bf16.msra.mxu1 %v3812_v48  ;;  %v2595_v48 = vunpack.c.l.s4 %v4037_v45 }
0x13a9   :  { %3681 = vmatprep.subr.bf16.mxu1 %v4034_v44 }
0x13ac   :  { %3682 = vmatpush3.bf16.msra.mxu1 %v3813_v24 }
0x13ad   :  { %2502 = vmatprep.subr.bf16.mxu1 %v3816_v49 }
0x1434   :  { %v2326_v39 = vpop.xlane.xlu0 %2325 }
0x1435   :  { %v2327_v40 = vmul.f32 0.015625, %v2326_v39  ;;  %v3855_v39 = vld [vmem:[%s4178_s12 + $0xf8] sm:$0xff]  }
0x1437   :  { %v2328_v41 = vsub.f32 %v2321_v36, %v2327_v40  ;;  %v3853_v36 = vld [vmem:[%s4178_s12 + $0xb0] sm:$0xff]   ;;  %v3856_v40 = vld [vmem:[%s4178_s12 + $0x38] sm:$0xff]  }
0x1439   :  { %v2329_v42 = vmul.f32 %v2328_v41, %v2328_v41 }
0x143b   :  { %v2330_v43 = vsel %vm147_vm1, %v2329_v42, 0.0  ;;  %v2448_v42 = vsub.s32 2, %v4443_v26 }
0x143c   :  { %2331 = vadd.xlane.f32.xlu1 %v2330_v43  ;;  %v2436_v43 = vld [vmem:[%s4750_s8] sm:$0xf] }
0x143d   :  { %v2441_v24 = vrot.slane %v2436_v43, %v4446_v13  ;;  %v2449_v49 = vrot.slane %v2436_v43, %v2448_v42  ;;  %v2445_v46 = vrot.slane %v2436_v43, %v4450_v30  ;;  %v2453_v50 = vrot.slane %v2436_v43, %v2452_v51 }
0x14c9   :  { %v2332_v54 = vpop.xlane.xlu1 %2331 }
0x14ca   :  { %v2333_v47 = vmul.f32 0.015625, %v2332_v54  ;;  %v2596_v54 = vunpack.c.0.s8 %v2595_v48 }
0x14cc   :  { %v2334_v44 = vadd.f32 1e-05, %v2333_v47  ;;  %v2599_v30 = vsub.s32 %v2596_v54, %v4443_v26 }
0x14ce   :  { %3950 = vrsqrt.f32 %v2334_v44 }
0x14d8   :  { %v3951_v57 = vpop.eup %3950 }
0x14d9   :  { %v2336_v38 = vmul.f32 %v3951_v57, %v2328_v41  ;;  %v3857_v41 = vld [vmem:[%s4178_s12 + $0xb8] sm:$0xff]  }
0x14db   :  { %v2343_v59 = vmul.f32 %v3240_v58, %v2336_v38 }
0x14dd   :  { %v2350_v11 = vadd.f32 %v3241_v22, %v2343_v59 }
0x14df   :  { %v2351_v60 = vpack.c.bf16 %v2350_v11, %v2350_v11 }
0x14e1   :  { %3684 = vmatmul.mubr.msk.bf16.vlgmr.msra.gmra.mrb[72].mxu1 %vm143_vm0, %v2351_v60 }
0x14e2   :  { %2503 = vmatpush1.bf16.msra.mxu1 %v3814_v29  ;;  %2534 = vmatprep.mubr.bf16.mxu1 %v4036_v35 }
0x14e3   :  { %2504 = vmatprep.subr.bf16.mxu1 %v3822_v34 }
0x14e6   :  { %2505 = vmatpush1.bf16.msra.mxu1 %v3820_v14 }
0x14e7   :  { %3415 = vmatprep.subr.bf16.mxu1 %v3826_v61 }
0x15b4   :  { %v2421_v63 = vpop.f32.mrb[72].mxu1 }
0x15b5   :  { %v2427_v55 = vpack.c.bf16 %v2421_v63, %v2421_v63  ;;  %v3685_v3 = vpop.f32.mrb[73].mxu1 }
0x15b6   :  { %v2424_v35 = vpop.f32.mrb[74].mxu1 }
0x15b7   :  { %v3686_v6 = vpop.f32.mrb[75].mxu1  ;;  %3255 = vmatmul.mubr.msk.bf16.vlgmr.msra.gmra.mrb[76].mxu1 %vm2498_vm8, %v2427_v55  ;;  %3256 = vmatmul.mubr.msk.bf16.vlgmr.msra.gmra.mrb[72].mxu0 %vm2498_vm8, %v2427_v55 }
0x15b8   :  { %3416 = vmatpush3.bf16.msra.mxu1 %v3828_v1  ;;  %3438 = vmatpush3.bf16.msra.mxu0 %v3829_v53 }
0x15b9   :  { %3417 = vmatprep.subr.bf16.mxu1 %v3830_v4  ;;  %3439 = vmatprep.subr.bf16.mxu0 %v3831_v32 }
0x15bc   :  { %3418 = vmatpush3.bf16.msra.mxu1 %v3832_v8  ;;  %3440 = vmatpush3.bf16.msra.mxu0 %v3833_v9 }
0x15bd   :  { %3419 = vmatprep.subr.bf16.mxu1 %v3834_v0  ;;  %3441 = vmatprep.subr.bf16.mxu0 %v3835_v12 }
0x15c0   :  { %3420 = vmatpush3.bf16.msra.mxu1 %v3836_v15  ;;  %3442 = vmatpush3.bf16.msra.mxu0 %v3837_v2 }
0x15c1   :  { %3421 = vmatprep.subr.bf16.mxu1 %v3838_v16  ;;  %3443 = vmatprep.subr.bf16.mxu0 %v3839_v17 }
0x15c4   :  { %3422 = vmatpush3.bf16.msra.mxu1 %v3840_v18  ;;  %3444 = vmatpush3.bf16.msra.mxu0 %v3841_v52 }
0x15c5   :  { %3423 = vmatprep.subr.bf16.mxu1 %v3842_v56  ;;  %3445 = vmatprep.subr.bf16.mxu0 %v3843_v5 }
0x15c8   :  { %3424 = vmatpush3.bf16.msra.mxu1 %v3844_v19  ;;  %3446 = vmatpush3.bf16.msra.mxu0 %v3845_v10 }
0x15c9   :  { %3425 = vmatprep.subr.bf16.mxu1 %v3846_v7  ;;  %3447 = vmatprep.subr.bf16.mxu0 %v3847_v20 }
0x15cc   :  { %3426 = vmatpush3.bf16.msra.mxu1 %v3848_v25  ;;  %3448 = vmatpush3.bf16.msra.mxu0 %v3849_v27 }
0x15cd   :  { %3427 = vmatprep.subr.bf16.mxu1 %v3850_v28  ;;  %3449 = vmatprep.subr.bf16.mxu0 %v3851_v31 }
0x15d0   :  { %3428 = vmatpush3.bf16.msra.mxu1 %v3852_v33  ;;  %3450 = vmatpush3.bf16.msra.mxu0 %v3853_v36 }
0x15d1   :  { %3429 = vmatprep.subr.bf16.mxu1 %v3854_v37  ;;  %3451 = vmatprep.subr.bf16.mxu0 %v3855_v39 }
0x15d4   :  { %3430 = vmatpush3.bf16.msra.mxu1 %v3856_v40  ;;  %3452 = vmatpush3.bf16.msra.mxu0 %v3857_v41 }
0x168a   :  { %v2536_v23 = vpop.f32.mrb[76].mxu1  ;;  %v2577_v21 = vpop.f32.mrb[72].mxu0 }
0x168b   :  { %v2537_v47 = vadd.f32 %v2536_v23, %v2441_v24  ;;  %v2578_v44 = vadd.f32 %v2577_v21, %v2449_v49  ;;  %v2538_v57 = vpop.f32.mrb[77].mxu1  ;;  %v2579_v58 = vpop.f32.mrb[73].mxu0 }
0x168c   :  { %v2539_v38 = vadd.f32 %v2538_v57, %v2445_v46  ;;  %v2580_v22 = vadd.f32 %v2579_v58, %v2453_v50  ;;  %v2540_v59 = vpop.f32.mrb[78].mxu1  ;;  %v2581_v11 = vpop.f32.mrb[74].mxu0 }
0x168d   :  { %v2584_v29 = vmax.f32 %v2537_v47, 0.0  ;;  %v2586_v60 = vmax.f32 %v2578_v44, 0.0  ;;  %v2541_v34 = vpop.f32.mrb[79].mxu1  ;;  %v2582_v14 = vpop.f32.mrb[75].mxu0 }
0x168e   :  { %v2585_v13 = vmax.f32 %v2539_v38, 0.0  ;;  %v2587_v61 = vmax.f32 %v2580_v22, 0.0 }
0x168f   :  { %v2611_v55 = vpack.c.bf16 %v2584_v29, %v2584_v29  ;;  %v2613_v3 = vpack.c.bf16 %v2586_v60, %v2586_v60 }
0x1690   :  { %v2592_v62 = vcombine.low %v2584_v29, %v2585_v13  ;;  %v2612_v63 = vpack.c.bf16 %v2585_v13, %v2585_v13  ;;  %v2593_v1 = vcombine.low %v2586_v60, %v2587_v61  ;;  %v2614_v53 = vpack.c.bf16 %v2587_v61, %v2587_v61 }
0x1692   :  { %2910 = vmatprep.mubr.bf16.mxu1 %v2612_v63  ;;  %2950 = vmatprep.mubr.bf16.mxu0 %v2614_v53  ;;  %v2600_v4 = vrot.slane %v2592_v62, %v2599_v30  ;;  %v2607_v32 = vrot.slane %v2593_v1, %v2599_v30 }
0x1693   :  { %2911 = vmatmul.mubr.bf16.vlgmr.msra.gmra.mrb[80].mxu1 %v2611_v55  ;;  %2951 = vmatmul.mubr.bf16.vlgmr.msra.gmra.mrb[76].mxu0 %v2613_v3 }
0x1694   :  { %v2608_v35 = vcombine.low %v2600_v4, %v2607_v32 }
0x1696   :  { %2610 = vst [vmem:[#allocation4] sm:$0xff] %v2608_v35 }
0x1697   :  { %3968 = shalt.err (!%p3965_p4)
}
0x1698   :  { %s3969_s30 = scalar_lea.hbm %s4193_s4, 128 }
0x1699   :  { %p3970_p5 = scmp.ne.s32.totalorder %s4193_s4, %s3969_s30  ;;  %p3973_p6 = scmp.lt.u32.totalorder %s3969_s30, %s4193_s4 }
0x169b   :  { %p3975_p7 = pnand %p3973_p6, %p3970_p5 }
0x169d   :  { %3978 = shalt.err (!%p3975_p7)
}
0x169e   :  { %2978 = dma.vmem_to_hbm [thread:$0]  %s2976_s19, 128, %s4193_s4, [#allocation5]   ;;  %v3257_v8 = vld [vmem:[%s4183_s20] ss:$0 sm:$0xff] }
0x169f   :  { %s4039_s6 = smov [#allocation2]  }
0x16a0   :  { %s2965_s12 = sshll.u32 %s4039_s6, 4  ;;  %s2966_s12 = int_to_ptr.vmem [resolvable:$true] %s2965_s12 }
0x16a1   :  { %s3979_s11 = scalar_lea.vmem %s2966_s12, 32  ;;  %p3984_p9 = scmp.lt.s32.totalorder %s2966_s12, %s2966_s12 }
0x16a2   :  { %p3980_p8 = scmp.ne.s32.totalorder %s2966_s12, %s3979_s11  ;;  %p3985_p10 = scmp.lt.s32.totalorder %s3979_s11, %s3979_s11 }
0x16a4   :  { %p3986_p11 = por %p3985_p10, %p3984_p9 }
0x16a6   :  { %p3987_p12 = pnand %p3986_p11, %p3980_p8 }
0x1766   :  { %v3431_v26 = vpop.f32.mrb[80].mxu1  ;;  %v3453_v6 = vpop.f32.mrb[76].mxu0 }
0x1767   :  { %v3432_v9 = vpop.f32.mrb[81].mxu1  ;;  %v3454_v0 = vpop.f32.mrb[77].mxu0 }
0x1768   :  { %v3433_v12 = vadd.f32 %v3432_v9, %v3431_v26  ;;  %v3455_v15 = vadd.f32 %v3454_v0, %v3453_v6  ;;  %v3434_v2 = vpop.f32.mrb[82].mxu1  ;;  %v3456_v16 = vpop.f32.mrb[78].mxu0 }
0x1769   :  { %v3435_v17 = vpop.f32.mrb[83].mxu1  ;;  %v3457_v18 = vpop.f32.mrb[79].mxu0 }
0x176a   :  { %v2913_v52 = vadd.f32 %v3433_v12, %v3257_v8 }
0x176c   :  { %v2953_v56 = vadd.f32 %v3455_v15, %v2913_v52 }
0x176e   :  { %2958 = vst [vmem:[#allocation2] sm:$0x3] %v2953_v56 }
0x176f   :  { %3990 = shalt.err (!%p3987_p12)
}
0x1770   :  { %s3991_s20 = scalar_lea.hbm %s4188_s27, 32 }
0x1771   :  { %p3992_p13 = scmp.ne.s32.totalorder %s4188_s27, %s3991_s20  ;;  %p3995_p0 = scmp.lt.u32.totalorder %s3991_s20, %s4188_s27 }
0x1773   :  { %p3997_p1 = pnand %p3995_p0, %p3992_p13 }
0x1775   :  { %4000 = shalt.err (!%p3997_p1)
}
0x1776   :  { %2968 = dma.vmem_to_hbm [thread:$0]  %s2966_s12, 32, %s4188_s27, [#allocation3]  }
0x1777   :  { %4001 = dma.done.wait [#allocation3], 32  }
0x1778   :  { %4002 = vsyncadd [#allocation3], 4294967264 }
0x1779   :  { %4003 = dma.done.wait [#allocation5], 128  }
0x177a   :  { %4004 = vsyncadd [#allocation5], 4294967168 }
0x177b   :  { %2985 = vsyncpa [#allocation3], 1 }
0x177c   :  { %2986 = vsyncpa [#allocation5], 1 }

</bundles_post_ra>
